<compile_context>
chip_gen: v6e
topology: v6e:2x2x1
jax: 0.10.0
libtpu: 0.0.40
codegen_flags: <defaults>
</compile_context>

<pallas_src>
import jax
import jax.numpy as jnp
from jax.experimental import pallas as pl
from jax.experimental.pallas import tpu as pltpu


# --------------------------- VMEM budget helpers -----------------------------

def _vmem_limit_bytes():
    """Per-kernel VMEM limit derived from the chip (v7x: 64 MiB physical ->
    ~48 MiB; v5e/v6e: 128 MiB -> ~96 MiB). Conservative fallback if the query
    is unavailable."""
    try:
        cap = int(pltpu.get_tpu_info().vmem_capacity_bytes)
    except Exception:
        cap = 64 * 1024 * 1024
    return (cap * 3) // 4


def _divisors(n):
    return [d for d in range(1, n + 1) if n % d == 0]


def _pick_batch_tile(batch, per_batch_bytes, fixed_bytes, budget):
    """Largest divisor of `batch` whose per-step working set fits `budget`,
    preferring >= 2 grid steps so both v7x TensorCores get work."""
    feas = [d for d in _divisors(batch)
            if fixed_bytes + d * per_batch_bytes <= budget]
    if not feas:
        return 1
    pref = [d for d in feas if batch // d >= 2]
    return max(pref) if pref else max(feas)


def _pick_row_tile(rows, per_row_bytes, budget, align=8):
    """Largest multiple-of-`align` divisor of `rows` that fits `budget`,
    preferring >= 2 grid steps. Falls back to the full extent (always legal)."""
    if rows % align != 0:
        return rows
    cand = [d for d in _divisors(rows) if d % align == 0]
    feas = [d for d in cand if d * per_row_bytes <= budget]
    if not feas:
        return align
    pref = [d for d in feas if rows // d >= 2]
    return max(pref) if pref else max(feas)


# ------------------------------ Pallas kernels ------------------------------

def _make_conv_softmax_kernel(H, W):
    """3x3 conv (width taps pre-packed into K, height taps = grid reduction)
    + modality softmax + attention-weighted content sum, all fused."""
    HW = H * W

    def kernel(xw_ref, w_ref, b_ref, cont_ref, am_ref, res_ref, acc_ref):
        # xw_ref:   (n_mod, tb, (H+2)*W, 6C) bf16  width-packed padded rows
        # w_ref:    (1, 6C, C)               bf16  per-height-tap weight
        # b_ref:    (1, C)                   f32   conv bias
        # cont_ref: (n_mod, tb, H*W, C)      bf16  content to fuse
        # am_ref:   (n_mod, tb, H*W, C)      f32   raw conv logits (returned a_m)
        # res_ref:  (tb, H*W, C)             f32   softmax-weighted content sum
        # acc_ref:  (n_mod*tb*H*W, C)        f32   conv accumulator (scratch)
        kh = pl.program_id(1)
        n_mod, tb, _, C = am_ref.shape

        @pl.when(kh == 0)
        def _init():
            # Bias folded into the accumulator init (one broadcast per tile).
            acc_ref[...] = jnp.broadcast_to(
                b_ref[...].astype(jnp.float32), acc_ref.shape)

        # Height tap kh == padded rows [kh*W, kh*W + H*W) of the flattened
        # (H+2)*W row axis; a pure row-offset slice, no lane relayout.
        start = kh * W
        if W % 8 == 0:
            start = pl.multiple_of(start, 8)
        x = xw_ref[:, :, pl.ds(start, HW), :]            # (n_mod, tb, HW, 6C)
        xm = x.reshape(n_mod * tb * HW, x.shape[-1])
        # Single MXU contraction for all modalities (M = n_mod*tb*HW, K = 6C).
        acc_ref[...] += jnp.dot(xm, w_ref[0], preferred_element_type=jnp.float32)

        @pl.when(kh == pl.num_programs(1) - 1)
        def _epilogue():
            a = acc_ref[...]                              # f32 conv logits
            am_ref[...] = a.reshape(n_mod, tb, HW, C).astype(am_ref.dtype)
            a3 = a.reshape(n_mod, tb * HW, C)
            mx = jnp.max(a3, axis=0, keepdims=True)
            e = jnp.exp(a3 - mx)
            denom = jnp.sum(e, axis=0)
            cont = cont_ref[...].reshape(n_mod, tb * HW, C).astype(jnp.float32)
            num = jnp.sum(e * cont, axis=0)
            res = num * pl.reciprocal(denom, approx=True)
            res_ref[...] = res.reshape(tb, HW, C).astype(res_ref.dtype)

    return kernel


def _softmax_fuse_kernel(c_ref, res_ref):
    # c_ref: (n_mod, tm, C) bf16 (content == a_m on this path); res_ref: (tm, C) f32.
    a = c_ref[...].astype(jnp.float32)
    mx = jnp.max(a, axis=0, keepdims=True)
    e = jnp.exp(a - mx)
    denom = jnp.sum(e, axis=0)
    num = jnp.sum(e * a, axis=0)
    res_ref[...] = (num * pl.reciprocal(denom, approx=True)).astype(res_ref.dtype)


# ------------------------------- host wrappers -------------------------------

def _fused_conv_softmax(xw, w3, b2, cont, H, W):
    n_mod, B, HPW, K3 = xw.shape
    C = w3.shape[-1]
    HW = H * W
    limit = _vmem_limit_bytes()
    budget = int(limit * 0.85)
    per_b = (2 * n_mod * HPW * K3 * 2          # xw (bf16, double-buffered)
             + 2 * n_mod * HW * C * 2          # content (bf16)
             + 2 * n_mod * HW * C * 4          # a_m out (f32)
             + 2 * HW * C * 4                  # res out (f32)
             + n_mod * HW * C * 4)             # f32 accumulator scratch
    fixed = 2 * K3 * C * 2 + 2 * C * 4         # per-tap weight + bias
    tb = _pick_batch_tile(B, per_b, fixed, budget)

    a_m, res = pl.pallas_call(
        _make_conv_softmax_kernel(H, W),
        out_shape=(jax.ShapeDtypeStruct((n_mod, B, HW, C), jnp.float32),
                   jax.ShapeDtypeStruct((B, HW, C), jnp.float32)),
        grid=(B // tb, 3),
        in_specs=[
            pl.BlockSpec((n_mod, tb, HPW, K3), lambda b, k: (0, b, 0, 0)),
            pl.BlockSpec((1, K3, C), lambda b, k: (k, 0, 0)),
            pl.BlockSpec((1, C), lambda b, k: (0, 0)),
            pl.BlockSpec((n_mod, tb, HW, C), lambda b, k: (0, b, 0, 0)),
        ],
        out_specs=(pl.BlockSpec((n_mod, tb, HW, C), lambda b, k: (0, b, 0, 0)),
                   pl.BlockSpec((tb, HW, C), lambda b, k: (b, 0, 0))),
        scratch_shapes=[pltpu.VMEM((n_mod * tb * HW, C), jnp.float32)],
        compiler_params=pltpu.CompilerParams(
            dimension_semantics=("parallel", "arbitrary"),
            vmem_limit_bytes=limit),
    )(xw, w3, b2, cont)
    return a_m, res


def _softmax_fuse(cont):
    # cont: (n_mod, M, C) bf16 -> res (M, C) f32; softmax over modality axis.
    n_mod, M, C = cont.shape
    limit = _vmem_limit_bytes()
    budget = int(limit * 0.85)
    per_row = 2 * n_mod * C * 2 + 2 * C * 4    # bf16 in + f32 out, double-buffered
    tm = _pick_row_tile(M, per_row, budget)
    return pl.pallas_call(
        _softmax_fuse_kernel,
        out_shape=jax.ShapeDtypeStruct((M, C), jnp.float32),
        grid=(M // tm,),
        in_specs=[pl.BlockSpec((n_mod, tm, C), lambda i: (0, i, 0))],
        out_specs=pl.BlockSpec((tm, C), lambda i: (i, 0)),
        compiler_params=pltpu.CompilerParams(
            dimension_semantics=("parallel",),
            vmem_limit_bytes=limit),
    )(cont)


def tfusion_forward(all_content, m_d, pre_am, conv_w_hwio, conv_b):
    """Channels-last (NHWC) equivalent of TFusion.forward. Returns (res, a_m).

    all_content / pre_am: lists of (B, H, W, C). `m_d` is unused (as in the
    reference forward). a_m is returned as (n_mod, B, H, W, C)."""
    del m_d  # unused by the reference forward as well
    n_mod = len(all_content)
    B, H, W, C = all_content[0].shape
    HW = H * W

    # TODO(synk): SwinTransformer fusion_block not provided -> identity. With an
    # identity fusion block the cat-along-H + per-modality H re-slice is a no-op
    # (atten_map_i == all_content[i]), so both HBM passes are skipped.
    if pre_am is None:
        a_m = jnp.stack(all_content, axis=0)                        # f32
        cont = a_m.astype(jnp.bfloat16).reshape(n_mod, B * HW, C)
        res = _softmax_fuse(cont)
        return res.reshape(B, H, W, C), a_m

    # Conv path: width taps packed into the channel (lane) axis once in the
    # wrapper (K = 3*2C, ~3.75x the conv input vs. 9x for full im2col); the 3
    # height taps are a K-reduction grid axis handled in-kernel.
    xcat = jnp.stack(
        [jnp.concatenate([all_content[i].astype(jnp.bfloat16),
                          pre_am[i].astype(jnp.bfloat16)], axis=-1)
         for i in range(n_mod)], axis=0)                            # (n,B,H,W,2C)
    xpad = jnp.pad(xcat, ((0, 0), (0, 0), (1, 1), (1, 1), (0, 0)))  # (n,B,H+2,W+2,2C)
    xw = jnp.concatenate([xpad[:, :, :, kw:kw + W, :] for kw in range(3)],
                         axis=-1)                                   # (n,B,H+2,W,6C)
    xw = xw.reshape(n_mod, B, (H + 2) * W, 3 * 2 * C)

    w3 = conv_w_hwio.reshape(3, 3 * 2 * C, C).astype(jnp.bfloat16)  # per-kh (6C, C)
    b2 = conv_b.reshape(1, C).astype(jnp.float32)
    cont = jnp.stack(all_content, axis=0).astype(jnp.bfloat16).reshape(n_mod, B, HW, C)

    a_m, res = _fused_conv_softmax(xw, w3, b2, cont, H, W)
    return res.reshape(B, H, W, C), a_m.reshape(n_mod, B, H, W, C)


# ------------------------------ pure-JAX reference ---------------------------

def _reference_forward(all_content, pre_am, conv_w_hwio, conv_b):
    """Reference on the same bf16-rounded streamed operands (f32 math)."""
    n_mod = len(all_content)
    B, H, W, C = all_content[0].shape
    M = B * H * W
    cont = jnp.stack(all_content, 0).astype(jnp.bfloat16).astype(jnp.float32)
    cont = cont.reshape(n_mod, M, C)
    if pre_am is None:
        a_m = jnp.stack(all_content, 0)
        logits = cont
    else:
        wf = conv_w_hwio.astype(jnp.bfloat16).astype(jnp.float32).reshape(9 * 2 * C, C)
        ams = []
        for i in range(n_mod):
            x = jnp.concatenate([all_content[i], pre_am[i]], axis=-1)
            x = x.astype(jnp.bfloat16).astype(jnp.float32)
            xp = jnp.pad(x, ((0, 0), (1, 1), (1, 1), (0, 0)))
            taps = [xp[:, kh:kh + H, kw:kw + W, :]
                    for kh in range(3) for kw in range(3)]
            p = jnp.concatenate(taps, -1).reshape(M, 9 * 2 * C)
            ams.append(jnp.dot(p, wf, precision=jax.lax.Precision.HIGHEST)
                       + conv_b.reshape(1, C))
        a_m = jnp.stack(ams, 0)
        logits = a_m
    wgt = jax.nn.softmax(logits.reshape(n_mod, M, C), axis=0)
    res = jnp.sum(wgt * cont, axis=0)
    return res.reshape(B, H, W, C), a_m.reshape(n_mod, B, H, W, C)


# ----------------------------------- driver ----------------------------------

if __name__ == "__main__":
    # Small toy shapes consistent with the module (feature_size=8 spatial);
    # C=128 keeps everything lane-dense while staying small.
    n_mod, B, H, W, C = 4, 2, 8, 8, 128

    key = jax.random.PRNGKey(0)
    keys = jax.random.split(key, 2 * n_mod + 2)
    all_content = [jax.random.normal(keys[i], (B, H, W, C), jnp.float32)
                   for i in range(n_mod)]
    pre_am = [jax.random.normal(keys[n_mod + i], (B, H, W, C), jnp.float32)
              for i in range(n_mod)]
    # Conv2d(2C -> C, k=3) parameters in HWIO layout.
    conv_w = 0.02 * jax.random.normal(keys[-2], (3, 3, 2 * C, C), jnp.float32)
    conv_b = 0.01 * jax.random.normal(keys[-1], (C,), jnp.float32)

    fwd = jax.jit(tfusion_forward)

    # Main path (pre_am provided): fused conv + softmax + attention kernel.
    res, a_m = fwd(all_content, None, pre_am, conv_w, conv_b)
    jax.block_until_ready((res, a_m))
    assert res.shape == (B, H, W, C)
    assert a_m.shape == (n_mod, B, H, W, C)

    res_ref, a_m_ref = _reference_forward(all_content, pre_am, conv_w, conv_b)
    assert float(jnp.max(jnp.abs(a_m - a_m_ref))) < 1e-2, "a_m mismatch"
    assert float(jnp.max(jnp.abs(res - res_ref))) < 3e-2, "res mismatch"

    # pre_am = None path: lane/sublane-dense softmax-fuse kernel only.
    res0, a_m0 = fwd(all_content, None, None, conv_w, conv_b)
    jax.block_until_ready((res0, a_m0))
    assert res0.shape == (B, H, W, C)
    assert a_m0.shape == (n_mod, B, H, W, C)
    res0_ref, a_m0_ref = _reference_forward(all_content, None, conv_w, conv_b)
    assert float(jnp.max(jnp.abs(a_m0 - a_m0_ref))) < 1e-6, "a_m (pre_am=None) mismatch"
    assert float(jnp.max(jnp.abs(res0 - res0_ref))) < 3e-2, "res (pre_am=None) mismatch"

    print("KERNEL_OK")
</pallas_src>

<mosaic_0001>
module attributes {stable_mosaic.version = 11 : i64} {
  func.func @kernel(%arg0: i32, %arg1: i32, %arg2: memref<4x1x80x768xbf16, #tpu.memory_space<vmem>>, %arg3: memref<1x768x128xbf16, #tpu.memory_space<vmem>>, %arg4: memref<1x128xf32, #tpu.memory_space<vmem>>, %arg5: memref<4x1x64x128xbf16, #tpu.memory_space<vmem>>, %arg6: memref<4x1x64x128xf32, #tpu.memory_space<vmem>>, %arg7: memref<1x64x128xf32, #tpu.memory_space<vmem>>, %arg8: memref<256x128xf32, #tpu.memory_space<vmem>>) attributes {dimension_semantics = [#tpu.dimension_semantics<parallel>, #tpu.dimension_semantics<arbitrary>], iteration_bounds = array<i64: 2, 3>, scalar_prefetch = 0 : i64, scratch_operands = 1 : i64, tpu.core_type = #tpu.core_type<tc>, window_params = [{transform_indices = @transform_0, window_bounds = array<i64: 4, 1, 80, 768>}, {transform_indices = @transform_1, window_bounds = array<i64: 1, 768, 128>}, {pipeline_mode = #tpu.pipeline_mode<synchronous>, transform_indices = @transform_2, window_bounds = array<i64: 1, 128>}, {transform_indices = @transform_3, window_bounds = array<i64: 4, 1, 64, 128>}, {transform_indices = @transform_4, window_bounds = array<i64: 4, 1, 64, 128>}, {transform_indices = @transform_5, window_bounds = array<i64: 1, 64, 128>}]} {
    %c0_i32 = arith.constant 0 : i32
    %0 = arith.cmpi eq, %arg1, %c0_i32 : i32
    %1 = arith.extui %0 : i1 to i32
    %c0_i32_0 = arith.constant 0 : i32
    %2 = arith.cmpi ne, %1, %c0_i32_0 : i32
    scf.if %2 {
      %c0_11 = arith.constant 0 : index
      %c0_12 = arith.constant 0 : index
      %17 = vector.load %arg4[%c0_11, %c0_12] : memref<1x128xf32, #tpu.memory_space<vmem>>, vector<1x128xf32>
      %18 = vector.shape_cast %17 : vector<1x128xf32> to vector<1x128xf32>
      %19 = vector.broadcast %18 : vector<1x128xf32> to vector<256x128xf32>
      %c0_13 = arith.constant 0 : index
      %c0_14 = arith.constant 0 : index
      %20 = vector.load %arg8[%c0_13, %c0_14] : memref<256x128xf32, #tpu.memory_space<vmem>>, vector<256x128xf32>
      tpu.vector_store %arg8[%c0_13, %c0_14], %19 {strides = array<i32>} : memref<256x128xf32, #tpu.memory_space<vmem>>, vector<256x128xf32>,
    } else {
    }
    %c8_i32 = arith.constant 8 : i32
    %3 = arith.muli %arg1, %c8_i32 : i32
    %4 = tpu.assume_multiple %3, 8 : i32
    %c0 = arith.constant 0 : index
    %c0_1 = arith.constant 0 : index
    %5 = arith.index_cast %4 : i32 to index
    %c0_2 = arith.constant 0 : index
    %6 = vector.load %arg2[%c0, %c0_1, %5, %c0_2] : memref<4x1x80x768xbf16, #tpu.memory_space<vmem>>, vector<4x1x64x768xbf16>
    %7 = vector.shape_cast %6 : vector<4x1x64x768xbf16> to vector<256x768xbf16>
    %c0_3 = arith.constant 0 : index
    %c0_4 = arith.constant 0 : index
    %8 = vector.load %arg8[%c0_3, %c0_4] : memref<256x128xf32, #tpu.memory_space<vmem>>, vector<256x128xf32>
    %c0_5 = arith.constant 0 : index
    %c0_6 = arith.constant 0 : index
    %c0_7 = arith.constant 0 : index
    %9 = vector.load %arg3[%c0_5, %c0_6, %c0_7] : memref<1x768x128xbf16, #tpu.memory_space<vmem>>, vector<1x768x128xbf16>
    %10 = vector.shape_cast %9 : vector<1x768x128xbf16> to vector<768x128xbf16>
    %cst = arith.constant dense<0.000000e+00> : vector<256x128xf32>
    %11 = tpu.matmul %7, %10, %cst {dimension_numbers = #tpu.dot_dimension_numbers<[1], [0], [0], [1], [0, 0, 1, 1], [], []>} : vector<256x768xbf16>, vector<768x128xbf16>, vector<256x128xf32> -> vector<256x128xf32>
    %12 = arith.addf %8, %11 : vector<256x128xf32>
    %c0_8 = arith.constant 0 : index
    %c0_9 = arith.constant 0 : index
    %13 = vector.load %arg8[%c0_8, %c0_9] : memref<256x128xf32, #tpu.memory_space<vmem>>, vector<256x128xf32>
    tpu.vector_store %arg8[%c0_8, %c0_9], %12 {strides = array<i32>} : memref<256x128xf32, #tpu.memory_space<vmem>>, vector<256x128xf32>,
    %c2_i32 = arith.constant 2 : i32
    %14 = arith.cmpi eq, %arg1, %c2_i32 : i32
    %15 = arith.extui %14 : i1 to i32
    %c0_i32_10 = arith.constant 0 : i32
    %16 = arith.cmpi ne, %15, %c0_i32_10 : i32
    scf.if %16 {
      %c0_11 = arith.constant 0 : index
      %c0_12 = arith.constant 0 : index
      %17 = vector.load %arg8[%c0_11, %c0_12] : memref<256x128xf32, #tpu.memory_space<vmem>>, vector<256x128xf32>
      %18 = vector.shape_cast %17 : vector<256x128xf32> to vector<4x1x64x128xf32>
      %c0_13 = arith.constant 0 : index
      %c0_14 = arith.constant 0 : index
      %c0_15 = arith.constant 0 : index
      %c0_16 = arith.constant 0 : index
      %19 = vector.load %arg6[%c0_13, %c0_14, %c0_15, %c0_16] : memref<4x1x64x128xf32, #tpu.memory_space<vmem>>, vector<4x1x64x128xf32>
      tpu.vector_store %arg6[%c0_13, %c0_14, %c0_15, %c0_16], %18 {strides = array<i32>} : memref<4x1x64x128xf32, #tpu.memory_space<vmem>>, vector<4x1x64x128xf32>,
      %20 = vector.shape_cast %17 : vector<256x128xf32> to vector<4x64x128xf32>
      %cst_17 = arith.constant dense<0xFF800000> : vector<64x128xf32>
      %21 = vector.multi_reduction <maximumf>, %20, %cst_17 [0] : vector<4x64x128xf32> to vector<64x128xf32>
      %22 = vector.shape_cast %21 : vector<64x128xf32> to vector<1x64x128xf32>
      %23 = vector.broadcast %22 : vector<1x64x128xf32> to vector<4x64x128xf32>
      %24 = arith.subf %20, %23 : vector<4x64x128xf32>
      %25 = math.exp %24 : vector<4x64x128xf32>
      %cst_18 = arith.constant dense<0.000000e+00> : vector<64x128xf32>
      %26 = vector.multi_reduction <add>, %25, %cst_18 [0] : vector<4x64x128xf32> to vector<64x128xf32>
      %c0_19 = arith.constant 0 : index
      %c0_20 = arith.constant 0 : index
      %c0_21 = arith.constant 0 : index
      %c0_22 = arith.constant 0 : index
      %27 = vector.load %arg5[%c0_19, %c0_20, %c0_21, %c0_22] : memref<4x1x64x128xbf16, #tpu.memory_space<vmem>>, vector<4x1x64x128xbf16>
      %28 = vector.shape_cast %27 : vector<4x1x64x128xbf16> to vector<4x64x128xbf16>
      %29 = arith.extf %28 : vector<4x64x128xbf16> to vector<4x64x128xf32>
      %30 = arith.mulf %25, %29 : vector<4x64x128xf32>
      %cst_23 = arith.constant dense<0.000000e+00> : vector<64x128xf32>
      %31 = vector.multi_reduction <add>, %30, %cst_23 [0] : vector<4x64x128xf32> to vector<64x128xf32>
      %32 = tpu.reciprocal %26 {approx = true} : vector<64x128xf32> -> vector<64x128xf32>
      %33 = arith.mulf %31, %32 : vector<64x128xf32>
      %34 = vector.shape_cast %33 : vector<64x128xf32> to vector<1x64x128xf32>
      %c0_24 = arith.constant 0 : index
      %c0_25 = arith.constant 0 : index
      %c0_26 = arith.constant 0 : index
      %35 = vector.load %arg7[%c0_24, %c0_25, %c0_26] : memref<1x64x128xf32, #tpu.memory_space<vmem>>, vector<1x64x128xf32>
      tpu.vector_store %arg7[%c0_24, %c0_25, %c0_26], %34 {strides = array<i32>} : memref<1x64x128xf32, #tpu.memory_space<vmem>>, vector<1x64x128xf32>,
    } else {
    }
    return
  }
  func.func @transform_0(%arg0: i32, %arg1: i32) -> (i32, i32, i32, i32) {
    %c0_i32 = arith.constant 0 : i32
    %c0_i32_0 = arith.constant 0 : i32
    %c0_i32_1 = arith.constant 0 : i32
    %c0_i32_2 = arith.constant 0 : i32
    return %c0_i32, %arg0, %c0_i32_0, %c0_i32_1 : i32, i32, i32, i32
  }
  func.func @transform_1(%arg0: i32, %arg1: i32) -> (i32, i32, i32) {
    %c0_i32 = arith.constant 0 : i32
    %c0_i32_0 = arith.constant 0 : i32
    %c0_i32_1 = arith.constant 0 : i32
    return %arg1, %c0_i32, %c0_i32_0 : i32, i32, i32
  }
  func.func @transform_2(%arg0: i32, %arg1: i32) -> (i32, i32) {
    %c0_i32 = arith.constant 0 : i32
    %c0_i32_0 = arith.constant 0 : i32
    %c0_i32_1 = arith.constant 0 : i32
    return %c0_i32, %c0_i32_0 : i32, i32
  }
  func.func @transform_3(%arg0: i32, %arg1: i32) -> (i32, i32, i32, i32) {
    %c0_i32 = arith.constant 0 : i32
    %c0_i32_0 = arith.constant 0 : i32
    %c0_i32_1 = arith.constant 0 : i32
    %c0_i32_2 = arith.constant 0 : i32
    return %c0_i32, %arg0, %c0_i32_0, %c0_i32_1 : i32, i32, i32, i32
  }
  func.func @transform_4(%arg0: i32, %arg1: i32) -> (i32, i32, i32, i32) {
    %c0_i32 = arith.constant 0 : i32
    %c0_i32_0 = arith.constant 0 : i32
    %c0_i32_1 = arith.constant 0 : i32
    %c0_i32_2 = arith.constant 0 : i32
    return %c0_i32, %arg0, %c0_i32_0, %c0_i32_1 : i32, i32, i32, i32
  }
  func.func @transform_5(%arg0: i32, %arg1: i32) -> (i32, i32, i32) {
    %c0_i32 = arith.constant 0 : i32
    %c0_i32_0 = arith.constant 0 : i32
    %c0_i32_1 = arith.constant 0 : i32
    return %arg0, %c0_i32, %c0_i32_0 : i32, i32, i32
  }
}

</mosaic_0001>

<bundles_post_ra>
// kernel: tfusion_forward.1
= control target key start
LH: loop header
LB: loop body
LE: loop exit
PB: predicated region body
PF: predicated region fallthrough
CT: control target
= control target key end

     0   :  { %s4938_s0 = inlined_call_operand.vmem [shape: bf16[4,2,80,768], index: 0, kind: input, shape index: {}]   ;;  %s4939_s1 = inlined_call_operand.vmem [shape: bf16[3,768,128], index: 1, kind: input, shape index: {}]   ;;  %s4940_s2 = inlined_call_operand.vmem [shape: f32[1,128], index: 2, kind: input, shape index: {}]   ;;  %s4941_s3 = inlined_call_operand.vmem [shape: bf16[4,2,64,128], index: 3, kind: input, shape index: {}]   ;;  %s4942_s4 = inlined_call_operand.hbm [shape: f32[4,2,64,128], index: 4, kind: output, shape index: {0}]   ;;  %s4943_s5 = inlined_call_operand.hbm [shape: f32[2,64,128], index: 5, kind: output, shape index: {1}]  }
   0x1   :  { %4945 = sst [smem:[#allocation21_spill]] %s4938_s0 }
   0x2   :  { %4946 = sst [smem:[#allocation22_spill]] %s4941_s3 }
   0x3   :  { %11 = vsyncpa [#allocation6], 0 }
   0x4   :  { %13 = vsyncpa [#allocation6 + $0x1], 0 }
   0x5   :  { %14 = vsyncpa [#allocation8], 0 }
   0x6   :  { %16 = vsyncpa [#allocation8 + $0x1], 0  ;;  %s3966_s18 = smov 0   ;;  %s3968_s19 = smov 0  }
   0x7   :  { %s3970_s20 = smov 0   ;;  %s3972_s21 = smov 0  }
   0x8   :  { %s3974_s22 = smov 0   ;;  %s3976_s23 = smov 0  }
   0x9   :  { %s3978_s24 = smov 0   ;;  %s3980_s25 = smov 0  }
   0xa LB: > { %s2858_s26 = sadd.s32 4294967295, %s3925_s25   ;;  %s2859_s27 = sadd.s32 4294967294, %s3925_s25   ;;  %s3925_s25 = sphi %s3980_s25, %s22_s25   ;;  %s3921_s24 = sphi %s3978_s24, %s4974_s24   ;;  %s3917_s23 = sphi %s3976_s23, %s4973_s23   ;;  %s3913_s22 = sphi %s3974_s22, %s4972_s22   ;;  %s3909_s21 = sphi %s3972_s21, %s4971_s21   ;;  %s3905_s20 = sphi %s3970_s20, %s4970_s20   ;;  %s3901_s19 = sphi %s3968_s19, %s4969_s19   ;;  %s3897_s18 = sphi %s3966_s18, %s4968_s18  }
   0xb   : > { %s31_s28 = sadd.s32 1, %s3917_s23  ;;  %s34_s29 = sadd.s32 1, %s3921_s24 }
   0xc   : > { %p32_p0 = scmp.ge.s32.totalorder %s31_s28, 3  ;;  %p48_p1 = scmp.ne.s32.totalorder %s3905_s20, %s3901_s19 }
   0xd   : > { %p49_p2 = scmp.eq.s32.totalorder %s3925_s25, 0  ;;  %p151_p4 = scmp.eq.s32.totalorder %s2858_s26, 5 }
   0xe   : > { %s4976_s28 = smov (%p32_p0, %s31_s28), 0  ;;  %s4978_s29 = smov (!%p32_p0, %s34_s29), %s3921_s24 }
   0xf   : > { %4947 = sst [smem:[#allocation13_spill]] %s4976_s28  ;;  %p4016_p3 = por %p49_p2, %p48_p1 }
  0x10   : > { %p36_p5 = scmp.ge.s32.totalorder %s4978_s29, 2  ;;  %p156_p6 = scmp.ne.s32.totalorder %s3901_s19, %s3897_s18 }
  0x11   : > { %p4022_p7 = por %p151_p4, %p48_p1  ;;  %p157_p8 = scmp.eq.s32.totalorder %s2859_s27, 5 }
  0x12   : > { %s4980_s29 = smov (%p36_p5, %s4978_s29), 0  ;;  %s41_s9 = sadd.s32 1, %s3905_s20 }
  0x13   : > { %4950 = sst [smem:[#allocation14_spill]] %s4980_s29  ;;  %p4028_p9 = por %p157_p8, %p156_p6 }
  0x14   : > { %s38_s8 = ssub.s32 %s3921_s24, %s4980_s29  ;;  %p2861_p11 = scmp.ge.s32.totalorder %s3925_s25, 6 }
  0x15   : > { %p39_p10 = scmp.eq.s32.totalorder %s38_s8, 0 }
  0x16   : > { %202 = sbr.rel (%p2861_p11) target bundleno = 114 (0x72), region = 20 }
  0x17   : > { %s4036_s10 = scalar_select %p39_p10, %s3905_s20, %s41_s9  }
  0x1b   : > { %205 = sbr.rel (!%p4016_p3) target bundleno = 96 (0x60), region = 24  ;;  %s207_s11 = sand.u32 (%p4016_p3), 1, %s3905_s20  }
  0x1c   : > { %s3464_s12 = smul.u32 (%p4016_p3), 240, %s3921_s24  ;;  %s4952_s0 = sld [smem:[#allocation21_spill]] (%p4016_p3) }
  0x1d   : > { %s3463_s13 = smul.u32 (%p4016_p3), 960, %s207_s11 }
  0x1f   : > { %s4051_s17 = scalar_lea.vmem (%p4016_p3), [#allocation3], %s3463_s13 }
  0x22   : > { %s4046_s16 = scalar_lea.vmem %s4952_s0, %s3464_s12 }
  0x23   : > { %v225_v0 = vld [vmem:[%s4046_s16] sm:$0xff]  ;;  %v227_v1 = vld [vmem:[%s4046_s16 + $0x8] sm:$0xff]  ;;  %v229_v2 = vld [vmem:[%s4046_s16 + $0x10] sm:$0xff] }
  0x24   : > { %226 = vst [vmem:[%s4051_s17] sm:$0xff] %v225_v0  ;;  %228 = vst [vmem:[%s4051_s17 + $0x8] sm:$0xff] %v227_v1  ;;  %v231_v3 = vld [vmem:[%s4046_s16 + $0x18] sm:$0xff]  ;;  %v233_v4 = vld [vmem:[%s4046_s16 + $0x20] sm:$0xff] }
  0x25   : > { %230 = vst [vmem:[%s4051_s17 + $0x10] sm:$0xff] %v229_v2  ;;  %v235_v5 = vld [vmem:[%s4046_s16 + $0x28] sm:$0xff]  ;;  %232 = vst [vmem:[%s4051_s17 + $0x18] sm:$0xff] %v231_v3  ;;  %v237_v6 = vld [vmem:[%s4046_s16 + $0x30] sm:$0xff] }
  0x26   : > { %234 = vst [vmem:[%s4051_s17 + $0x20] sm:$0xff] %v233_v4  ;;  %236 = vst [vmem:[%s4051_s17 + $0x28] sm:$0xff] %v235_v5  ;;  %v239_v7 = vld [vmem:[%s4046_s16 + $0x38] sm:$0xff]  ;;  %v241_v8 = vld [vmem:[%s4046_s16 + $0x40] sm:$0xff] }
  0x27   : > { %238 = vst [vmem:[%s4051_s17 + $0x30] sm:$0xff] %v237_v6  ;;  %240 = vst [vmem:[%s4051_s17 + $0x38] sm:$0xff] %v239_v7  ;;  %v243_v9 = vld [vmem:[%s4046_s16 + $0x48] sm:$0xff]  ;;  %v245_v10 = vld [vmem:[%s4046_s16 + $0x50] sm:$0xff] }
  0x28   : > { %242 = vst [vmem:[%s4051_s17 + $0x40] sm:$0xff] %v241_v8  ;;  %v247_v11 = vld [vmem:[%s4046_s16 + $0x58] sm:$0xff]  ;;  %244 = vst [vmem:[%s4051_s17 + $0x48] sm:$0xff] %v243_v9  ;;  %v249_v12 = vld [vmem:[%s4046_s16 + $0x60] sm:$0xff] }
  0x29   : > { %246 = vst [vmem:[%s4051_s17 + $0x50] sm:$0xff] %v245_v10  ;;  %248 = vst [vmem:[%s4051_s17 + $0x58] sm:$0xff] %v247_v11  ;;  %v251_v13 = vld [vmem:[%s4046_s16 + $0x68] sm:$0xff]  ;;  %v253_v14 = vld [vmem:[%s4046_s16 + $0x70] sm:$0xff] }
  0x2a   : > { %250 = vst [vmem:[%s4051_s17 + $0x60] sm:$0xff] %v249_v12  ;;  %252 = vst [vmem:[%s4051_s17 + $0x68] sm:$0xff] %v251_v13  ;;  %v255_v15 = vld [vmem:[%s4046_s16 + $0x78] sm:$0xff]  ;;  %v257_v16 = vld [vmem:[%s4046_s16 + $0x80] sm:$0xff] }
  0x2b   : > { %254 = vst [vmem:[%s4051_s17 + $0x70] sm:$0xff] %v253_v14  ;;  %v259_v17 = vld [vmem:[%s4046_s16 + $0x88] sm:$0xff]  ;;  %256 = vst [vmem:[%s4051_s17 + $0x78] sm:$0xff] %v255_v15  ;;  %v261_v18 = vld [vmem:[%s4046_s16 + $0x90] sm:$0xff] }
  0x2c   : > { %258 = vst [vmem:[%s4051_s17 + $0x80] sm:$0xff] %v257_v16  ;;  %260 = vst [vmem:[%s4051_s17 + $0x88] sm:$0xff] %v259_v17  ;;  %v263_v19 = vld [vmem:[%s4046_s16 + $0x98] sm:$0xff]  ;;  %v265_v20 = vld [vmem:[%s4046_s16 + $0xa0] sm:$0xff] }
  0x2d   : > { %262 = vst [vmem:[%s4051_s17 + $0x90] sm:$0xff] %v261_v18  ;;  %264 = vst [vmem:[%s4051_s17 + $0x98] sm:$0xff] %v263_v19  ;;  %v267_v21 = vld [vmem:[%s4046_s16 + $0xa8] sm:$0xff]  ;;  %v269_v22 = vld [vmem:[%s4046_s16 + $0xb0] sm:$0xff] }
  0x2e   : > { %266 = vst [vmem:[%s4051_s17 + $0xa0] sm:$0xff] %v265_v20  ;;  %v271_v23 = vld [vmem:[%s4046_s16 + $0xb8] sm:$0xff]  ;;  %268 = vst [vmem:[%s4051_s17 + $0xa8] sm:$0xff] %v267_v21  ;;  %v273_v24 = vld [vmem:[%s4046_s16 + $0xc0] sm:$0xff] }
  0x2f   : > { %270 = vst [vmem:[%s4051_s17 + $0xb0] sm:$0xff] %v269_v22  ;;  %272 = vst [vmem:[%s4051_s17 + $0xb8] sm:$0xff] %v271_v23  ;;  %v275_v25 = vld [vmem:[%s4046_s16 + $0xc8] sm:$0xff]  ;;  %v277_v26 = vld [vmem:[%s4046_s16 + $0xd0] sm:$0xff] }
  0x30   : > { %274 = vst [vmem:[%s4051_s17 + $0xc0] sm:$0xff] %v273_v24  ;;  %276 = vst [vmem:[%s4051_s17 + $0xc8] sm:$0xff] %v275_v25  ;;  %v279_v27 = vld [vmem:[%s4046_s16 + $0xd8] sm:$0xff]  ;;  %v281_v28 = vld [vmem:[%s4046_s16 + $0xe0] sm:$0xff] }
  0x31   : > { %278 = vst [vmem:[%s4051_s17 + $0xd0] sm:$0xff] %v277_v26  ;;  %v283_v29 = vld [vmem:[%s4046_s16 + $0xe8] sm:$0xff]  ;;  %280 = vst [vmem:[%s4051_s17 + $0xd8] sm:$0xff] %v279_v27  ;;  %v285_v30 = vld [vmem:[%s4046_s16 + $0x1e0] sm:$0xff] }
  0x32   : > { %282 = vst [vmem:[%s4051_s17 + $0xe0] sm:$0xff] %v281_v28  ;;  %284 = vst [vmem:[%s4051_s17 + $0xe8] sm:$0xff] %v283_v29  ;;  %v287_v31 = vld [vmem:[%s4046_s16 + $0x1e8] sm:$0xff]  ;;  %v289_v32 = vld [vmem:[%s4046_s16 + $0x1f0] sm:$0xff] }
  0x33   : > { %286 = vst [vmem:[%s4051_s17 + $0xf0] sm:$0xff] %v285_v30  ;;  %288 = vst [vmem:[%s4051_s17 + $0xf8] sm:$0xff] %v287_v31  ;;  %v291_v33 = vld [vmem:[%s4046_s16 + $0x1f8] sm:$0xff]  ;;  %v293_v34 = vld [vmem:[%s4046_s16 + $0x200] sm:$0xff] }
  0x34   : > { %290 = vst [vmem:[%s4051_s17 + $0x100] sm:$0xff] %v289_v32  ;;  %v295_v35 = vld [vmem:[%s4046_s16 + $0x208] sm:$0xff]  ;;  %292 = vst [vmem:[%s4051_s17 + $0x108] sm:$0xff] %v291_v33  ;;  %v297_v36 = vld [vmem:[%s4046_s16 + $0x210] sm:$0xff] }
  0x35   : > { %294 = vst [vmem:[%s4051_s17 + $0x110] sm:$0xff] %v293_v34  ;;  %296 = vst [vmem:[%s4051_s17 + $0x118] sm:$0xff] %v295_v35  ;;  %v299_v37 = vld [vmem:[%s4046_s16 + $0x218] sm:$0xff]  ;;  %v301_v38 = vld [vmem:[%s4046_s16 + $0x220] sm:$0xff] }
  0x36   : > { %298 = vst [vmem:[%s4051_s17 + $0x120] sm:$0xff] %v297_v36  ;;  %300 = vst [vmem:[%s4051_s17 + $0x128] sm:$0xff] %v299_v37  ;;  %v303_v39 = vld [vmem:[%s4046_s16 + $0x228] sm:$0xff]  ;;  %v305_v40 = vld [vmem:[%s4046_s16 + $0x230] sm:$0xff] }
  0x37   : > { %302 = vst [vmem:[%s4051_s17 + $0x130] sm:$0xff] %v301_v38  ;;  %v307_v41 = vld [vmem:[%s4046_s16 + $0x238] sm:$0xff]  ;;  %304 = vst [vmem:[%s4051_s17 + $0x138] sm:$0xff] %v303_v39  ;;  %v309_v42 = vld [vmem:[%s4046_s16 + $0x240] sm:$0xff] }
  0x38   : > { %306 = vst [vmem:[%s4051_s17 + $0x140] sm:$0xff] %v305_v40  ;;  %308 = vst [vmem:[%s4051_s17 + $0x148] sm:$0xff] %v307_v41  ;;  %v311_v43 = vld [vmem:[%s4046_s16 + $0x248] sm:$0xff]  ;;  %v313_v44 = vld [vmem:[%s4046_s16 + $0x250] sm:$0xff] }
  0x39   : > { %310 = vst [vmem:[%s4051_s17 + $0x150] sm:$0xff] %v309_v42  ;;  %312 = vst [vmem:[%s4051_s17 + $0x158] sm:$0xff] %v311_v43  ;;  %v315_v45 = vld [vmem:[%s4046_s16 + $0x258] sm:$0xff]  ;;  %v317_v46 = vld [vmem:[%s4046_s16 + $0x260] sm:$0xff] }
  0x3a   : > { %314 = vst [vmem:[%s4051_s17 + $0x160] sm:$0xff] %v313_v44  ;;  %v319_v47 = vld [vmem:[%s4046_s16 + $0x268] sm:$0xff]  ;;  %316 = vst [vmem:[%s4051_s17 + $0x168] sm:$0xff] %v315_v45  ;;  %v321_v48 = vld [vmem:[%s4046_s16 + $0x270] sm:$0xff] }
  0x3b   : > { %318 = vst [vmem:[%s4051_s17 + $0x170] sm:$0xff] %v317_v46  ;;  %320 = vst [vmem:[%s4051_s17 + $0x178] sm:$0xff] %v319_v47  ;;  %v323_v49 = vld [vmem:[%s4046_s16 + $0x278] sm:$0xff]  ;;  %v325_v50 = vld [vmem:[%s4046_s16 + $0x280] sm:$0xff] }
  0x3c   : > { %322 = vst [vmem:[%s4051_s17 + $0x180] sm:$0xff] %v321_v48  ;;  %324 = vst [vmem:[%s4051_s17 + $0x188] sm:$0xff] %v323_v49  ;;  %v327_v51 = vld [vmem:[%s4046_s16 + $0x288] sm:$0xff]  ;;  %v329_v52 = vld [vmem:[%s4046_s16 + $0x290] sm:$0xff] }
  0x3d   : > { %326 = vst [vmem:[%s4051_s17 + $0x190] sm:$0xff] %v325_v50  ;;  %v331_v53 = vld [vmem:[%s4046_s16 + $0x298] sm:$0xff]  ;;  %328 = vst [vmem:[%s4051_s17 + $0x198] sm:$0xff] %v327_v51  ;;  %v333_v54 = vld [vmem:[%s4046_s16 + $0x2a0] sm:$0xff] }
  0x3e   : > { %330 = vst [vmem:[%s4051_s17 + $0x1a0] sm:$0xff] %v329_v52  ;;  %332 = vst [vmem:[%s4051_s17 + $0x1a8] sm:$0xff] %v331_v53  ;;  %v335_v55 = vld [vmem:[%s4046_s16 + $0x2a8] sm:$0xff]  ;;  %v337_v56 = vld [vmem:[%s4046_s16 + $0x2b0] sm:$0xff] }
  0x3f   : > { %334 = vst [vmem:[%s4051_s17 + $0x1b0] sm:$0xff] %v333_v54  ;;  %336 = vst [vmem:[%s4051_s17 + $0x1b8] sm:$0xff] %v335_v55  ;;  %v339_v57 = vld [vmem:[%s4046_s16 + $0x2b8] sm:$0xff]  ;;  %v341_v58 = vld [vmem:[%s4046_s16 + $0x2c0] sm:$0xff] }
  0x40   : > { %338 = vst [vmem:[%s4051_s17 + $0x1c0] sm:$0xff] %v337_v56  ;;  %v343_v59 = vld [vmem:[%s4046_s16 + $0x2c8] sm:$0xff]  ;;  %340 = vst [vmem:[%s4051_s17 + $0x1c8] sm:$0xff] %v339_v57  ;;  %v345_v60 = vld [vmem:[%s4046_s16 + $0x3c0] sm:$0xff] }
  0x41   : > { %342 = vst [vmem:[%s4051_s17 + $0x1d0] sm:$0xff] %v341_v58  ;;  %344 = vst [vmem:[%s4051_s17 + $0x1d8] sm:$0xff] %v343_v59  ;;  %v347_v61 = vld [vmem:[%s4046_s16 + $0x3c8] sm:$0xff]  ;;  %v349_v62 = vld [vmem:[%s4046_s16 + $0x3d0] sm:$0xff] }
  0x42   : > { %346 = vst [vmem:[%s4051_s17 + $0x1e0] sm:$0xff] %v345_v60  ;;  %348 = vst [vmem:[%s4051_s17 + $0x1e8] sm:$0xff] %v347_v61  ;;  %v351_v63 = vld [vmem:[%s4046_s16 + $0x3d8] sm:$0xff]  ;;  %v353_v0 = vld [vmem:[%s4046_s16 + $0x3e0] sm:$0xff] }
  0x43   : > { %350 = vst [vmem:[%s4051_s17 + $0x1f0] sm:$0xff] %v349_v62  ;;  %v355_v1 = vld [vmem:[%s4046_s16 + $0x3e8] sm:$0xff]  ;;  %352 = vst [vmem:[%s4051_s17 + $0x1f8] sm:$0xff] %v351_v63  ;;  %v357_v2 = vld [vmem:[%s4046_s16 + $0x3f0] sm:$0xff] }
  0x44   : > { %354 = vst [vmem:[%s4051_s17 + $0x200] sm:$0xff] %v353_v0  ;;  %356 = vst [vmem:[%s4051_s17 + $0x208] sm:$0xff] %v355_v1  ;;  %v359_v3 = vld [vmem:[%s4046_s16 + $0x3f8] sm:$0xff]  ;;  %v361_v4 = vld [vmem:[%s4046_s16 + $0x400] sm:$0xff] }
  0x45   : > { %358 = vst [vmem:[%s4051_s17 + $0x210] sm:$0xff] %v357_v2  ;;  %360 = vst [vmem:[%s4051_s17 + $0x218] sm:$0xff] %v359_v3  ;;  %v363_v5 = vld [vmem:[%s4046_s16 + $0x408] sm:$0xff]  ;;  %v365_v6 = vld [vmem:[%s4046_s16 + $0x410] sm:$0xff] }
  0x46   : > { %362 = vst [vmem:[%s4051_s17 + $0x220] sm:$0xff] %v361_v4  ;;  %v367_v7 = vld [vmem:[%s4046_s16 + $0x418] sm:$0xff]  ;;  %364 = vst [vmem:[%s4051_s17 + $0x228] sm:$0xff] %v363_v5  ;;  %v369_v8 = vld [vmem:[%s4046_s16 + $0x420] sm:$0xff] }
  0x47   : > { %366 = vst [vmem:[%s4051_s17 + $0x230] sm:$0xff] %v365_v6  ;;  %368 = vst [vmem:[%s4051_s17 + $0x238] sm:$0xff] %v367_v7  ;;  %v371_v9 = vld [vmem:[%s4046_s16 + $0x428] sm:$0xff]  ;;  %v373_v10 = vld [vmem:[%s4046_s16 + $0x430] sm:$0xff] }
  0x48   : > { %370 = vst [vmem:[%s4051_s17 + $0x240] sm:$0xff] %v369_v8  ;;  %372 = vst [vmem:[%s4051_s17 + $0x248] sm:$0xff] %v371_v9  ;;  %v375_v11 = vld [vmem:[%s4046_s16 + $0x438] sm:$0xff]  ;;  %v377_v12 = vld [vmem:[%s4046_s16 + $0x440] sm:$0xff] }
  0x49   : > { %374 = vst [vmem:[%s4051_s17 + $0x250] sm:$0xff] %v373_v10  ;;  %v379_v13 = vld [vmem:[%s4046_s16 + $0x448] sm:$0xff]  ;;  %376 = vst [vmem:[%s4051_s17 + $0x258] sm:$0xff] %v375_v11  ;;  %v381_v14 = vld [vmem:[%s4046_s16 + $0x450] sm:$0xff] }
  0x4a   : > { %378 = vst [vmem:[%s4051_s17 + $0x260] sm:$0xff] %v377_v12  ;;  %380 = vst [vmem:[%s4051_s17 + $0x268] sm:$0xff] %v379_v13  ;;  %v383_v15 = vld [vmem:[%s4046_s16 + $0x458] sm:$0xff]  ;;  %v385_v16 = vld [vmem:[%s4046_s16 + $0x460] sm:$0xff] }
  0x4b   : > { %382 = vst [vmem:[%s4051_s17 + $0x270] sm:$0xff] %v381_v14  ;;  %384 = vst [vmem:[%s4051_s17 + $0x278] sm:$0xff] %v383_v15  ;;  %v387_v17 = vld [vmem:[%s4046_s16 + $0x468] sm:$0xff]  ;;  %v389_v18 = vld [vmem:[%s4046_s16 + $0x470] sm:$0xff] }
  0x4c   : > { %386 = vst [vmem:[%s4051_s17 + $0x280] sm:$0xff] %v385_v16  ;;  %v391_v19 = vld [vmem:[%s4046_s16 + $0x478] sm:$0xff]  ;;  %388 = vst [vmem:[%s4051_s17 + $0x288] sm:$0xff] %v387_v17  ;;  %v393_v20 = vld [vmem:[%s4046_s16 + $0x480] sm:$0xff] }
  0x4d   : > { %390 = vst [vmem:[%s4051_s17 + $0x290] sm:$0xff] %v389_v18  ;;  %392 = vst [vmem:[%s4051_s17 + $0x298] sm:$0xff] %v391_v19  ;;  %v395_v21 = vld [vmem:[%s4046_s16 + $0x488] sm:$0xff]  ;;  %v397_v22 = vld [vmem:[%s4046_s16 + $0x490] sm:$0xff] }
  0x4e   : > { %394 = vst [vmem:[%s4051_s17 + $0x2a0] sm:$0xff] %v393_v20  ;;  %396 = vst [vmem:[%s4051_s17 + $0x2a8] sm:$0xff] %v395_v21  ;;  %v399_v23 = vld [vmem:[%s4046_s16 + $0x498] sm:$0xff]  ;;  %v401_v24 = vld [vmem:[%s4046_s16 + $0x4a0] sm:$0xff] }
  0x4f   : > { %398 = vst [vmem:[%s4051_s17 + $0x2b0] sm:$0xff] %v397_v22  ;;  %v403_v25 = vld [vmem:[%s4046_s16 + $0x4a8] sm:$0xff]  ;;  %400 = vst [vmem:[%s4051_s17 + $0x2b8] sm:$0xff] %v399_v23  ;;  %v405_v26 = vld [vmem:[%s4046_s16 + $0x5a0] sm:$0xff] }
  0x50   : > { %402 = vst [vmem:[%s4051_s17 + $0x2c0] sm:$0xff] %v401_v24  ;;  %404 = vst [vmem:[%s4051_s17 + $0x2c8] sm:$0xff] %v403_v25  ;;  %v407_v27 = vld [vmem:[%s4046_s16 + $0x5a8] sm:$0xff]  ;;  %v409_v28 = vld [vmem:[%s4046_s16 + $0x5b0] sm:$0xff] }
  0x51   : > { %406 = vst [vmem:[%s4051_s17 + $0x2d0] sm:$0xff] %v405_v26  ;;  %408 = vst [vmem:[%s4051_s17 + $0x2d8] sm:$0xff] %v407_v27  ;;  %v411_v29 = vld [vmem:[%s4046_s16 + $0x5b8] sm:$0xff]  ;;  %v413_v30 = vld [vmem:[%s4046_s16 + $0x5c0] sm:$0xff] }
  0x52   : > { %410 = vst [vmem:[%s4051_s17 + $0x2e0] sm:$0xff] %v409_v28  ;;  %v415_v31 = vld [vmem:[%s4046_s16 + $0x5c8] sm:$0xff]  ;;  %412 = vst [vmem:[%s4051_s17 + $0x2e8] sm:$0xff] %v411_v29  ;;  %v417_v32 = vld [vmem:[%s4046_s16 + $0x5d0] sm:$0xff] }
  0x53   : > { %414 = vst [vmem:[%s4051_s17 + $0x2f0] sm:$0xff] %v413_v30  ;;  %416 = vst [vmem:[%s4051_s17 + $0x2f8] sm:$0xff] %v415_v31  ;;  %v419_v33 = vld [vmem:[%s4046_s16 + $0x5d8] sm:$0xff]  ;;  %v421_v34 = vld [vmem:[%s4046_s16 + $0x5e0] sm:$0xff] }
  0x54   : > { %418 = vst [vmem:[%s4051_s17 + $0x300] sm:$0xff] %v417_v32  ;;  %420 = vst [vmem:[%s4051_s17 + $0x308] sm:$0xff] %v419_v33  ;;  %v423_v35 = vld [vmem:[%s4046_s16 + $0x5e8] sm:$0xff]  ;;  %v425_v36 = vld [vmem:[%s4046_s16 + $0x5f0] sm:$0xff] }
  0x55   : > { %422 = vst [vmem:[%s4051_s17 + $0x310] sm:$0xff] %v421_v34  ;;  %v427_v37 = vld [vmem:[%s4046_s16 + $0x5f8] sm:$0xff]  ;;  %424 = vst [vmem:[%s4051_s17 + $0x318] sm:$0xff] %v423_v35  ;;  %v429_v38 = vld [vmem:[%s4046_s16 + $0x600] sm:$0xff] }
  0x56   : > { %426 = vst [vmem:[%s4051_s17 + $0x320] sm:$0xff] %v425_v36  ;;  %428 = vst [vmem:[%s4051_s17 + $0x328] sm:$0xff] %v427_v37  ;;  %v431_v39 = vld [vmem:[%s4046_s16 + $0x608] sm:$0xff]  ;;  %v433_v40 = vld [vmem:[%s4046_s16 + $0x610] sm:$0xff] }
  0x57   : > { %430 = vst [vmem:[%s4051_s17 + $0x330] sm:$0xff] %v429_v38  ;;  %432 = vst [vmem:[%s4051_s17 + $0x338] sm:$0xff] %v431_v39  ;;  %v435_v41 = vld [vmem:[%s4046_s16 + $0x618] sm:$0xff]  ;;  %v437_v42 = vld [vmem:[%s4046_s16 + $0x620] sm:$0xff] }
  0x58   : > { %434 = vst [vmem:[%s4051_s17 + $0x340] sm:$0xff] %v433_v40  ;;  %v439_v43 = vld [vmem:[%s4046_s16 + $0x628] sm:$0xff]  ;;  %436 = vst [vmem:[%s4051_s17 + $0x348] sm:$0xff] %v435_v41  ;;  %v441_v44 = vld [vmem:[%s4046_s16 + $0x630] sm:$0xff] }
  0x59   : > { %438 = vst [vmem:[%s4051_s17 + $0x350] sm:$0xff] %v437_v42  ;;  %440 = vst [vmem:[%s4051_s17 + $0x358] sm:$0xff] %v439_v43  ;;  %v443_v45 = vld [vmem:[%s4046_s16 + $0x638] sm:$0xff]  ;;  %v445_v46 = vld [vmem:[%s4046_s16 + $0x640] sm:$0xff] }
  0x5a   : > { %442 = vst [vmem:[%s4051_s17 + $0x360] sm:$0xff] %v441_v44  ;;  %444 = vst [vmem:[%s4051_s17 + $0x368] sm:$0xff] %v443_v45  ;;  %v447_v47 = vld [vmem:[%s4046_s16 + $0x648] sm:$0xff]  ;;  %v449_v48 = vld [vmem:[%s4046_s16 + $0x650] sm:$0xff] }
  0x5b   : > { %446 = vst [vmem:[%s4051_s17 + $0x370] sm:$0xff] %v445_v46  ;;  %v451_v49 = vld [vmem:[%s4046_s16 + $0x658] sm:$0xff]  ;;  %448 = vst [vmem:[%s4051_s17 + $0x378] sm:$0xff] %v447_v47  ;;  %v453_v50 = vld [vmem:[%s4046_s16 + $0x660] sm:$0xff] }
  0x5c   : > { %450 = vst [vmem:[%s4051_s17 + $0x380] sm:$0xff] %v449_v48  ;;  %452 = vst [vmem:[%s4051_s17 + $0x388] sm:$0xff] %v451_v49  ;;  %v455_v51 = vld [vmem:[%s4046_s16 + $0x668] sm:$0xff]  ;;  %v457_v52 = vld [vmem:[%s4046_s16 + $0x670] sm:$0xff] }
  0x5d   : > { %454 = vst [vmem:[%s4051_s17 + $0x390] sm:$0xff] %v453_v50  ;;  %456 = vst [vmem:[%s4051_s17 + $0x398] sm:$0xff] %v455_v51  ;;  %v459_v53 = vld [vmem:[%s4046_s16 + $0x678] sm:$0xff]  ;;  %v461_v54 = vld [vmem:[%s4046_s16 + $0x680] sm:$0xff] }
  0x5e   : > { %458 = vst [vmem:[%s4051_s17 + $0x3a0] sm:$0xff] %v457_v52  ;;  %v463_v55 = vld [vmem:[%s4046_s16 + $0x688] sm:$0xff]  ;;  %460 = vst [vmem:[%s4051_s17 + $0x3a8] sm:$0xff] %v459_v53 }
  0x5f   : > { %462 = vst [vmem:[%s4051_s17 + $0x3b0] sm:$0xff] %v461_v54  ;;  %464 = vst [vmem:[%s4051_s17 + $0x3b8] sm:$0xff] %v463_v55 }
  0x60 PF: > { %478 = sbr.rel (!%p4016_p3) target bundleno = 114 (0x72), region = 51  ;;  %s480_s26 = sand.u32 (%p4016_p3), 1, %s3905_s20  }
  0x61   : > { %s3028_s27 = sshll.u32 (%p4016_p3), %s3921_s24, 5  ;;  %s2863_s8 = sshll.u32 (%p4016_p3), %s480_s26, 7 }
  0x62   : > { %s4953_s3 = sld [smem:[#allocation22_spill]] (%p4016_p3)  ;;  %s482_s30 = scalar_lea.vmem (%p4016_p3), [#allocation4], %s2863_s8 }
  0x68   : > { %s4297_s12 = scalar_lea.vmem %s4953_s3, %s3028_s27 }
  0x69   : > { %v502_v56 = vld [vmem:[%s4297_s12] sm:$0xff]   ;;  %v506_v57 = vld [vmem:[%s4297_s12 + $0x8] sm:$0xff]   ;;  %v510_v58 = vld [vmem:[%s4297_s12 + $0x10] sm:$0xff]  }
  0x6a   : > { %503 = vst [vmem:[%s482_s30] sm:$0xff] %v502_v56   ;;  %507 = vst [vmem:[%s482_s30 + $0x8] sm:$0xff] %v506_v57   ;;  %v514_v59 = vld [vmem:[%s4297_s12 + $0x18] sm:$0xff]   ;;  %v518_v60 = vld [vmem:[%s4297_s12 + $0x40] sm:$0xff]  }
  0x6b   : > { %511 = vst [vmem:[%s482_s30 + $0x10] sm:$0xff] %v510_v58   ;;  %v522_v61 = vld [vmem:[%s4297_s12 + $0x48] sm:$0xff]   ;;  %515 = vst [vmem:[%s482_s30 + $0x18] sm:$0xff] %v514_v59   ;;  %v526_v62 = vld [vmem:[%s4297_s12 + $0x50] sm:$0xff]  }
  0x6c   : > { %519 = vst [vmem:[%s482_s30 + $0x20] sm:$0xff] %v518_v60   ;;  %523 = vst [vmem:[%s482_s30 + $0x28] sm:$0xff] %v522_v61   ;;  %v530_v63 = vld [vmem:[%s4297_s12 + $0x58] sm:$0xff]   ;;  %v534_v0 = vld [vmem:[%s4297_s12 + $0x80] sm:$0xff]  }
  0x6d   : > { %527 = vst [vmem:[%s482_s30 + $0x30] sm:$0xff] %v526_v62   ;;  %531 = vst [vmem:[%s482_s30 + $0x38] sm:$0xff] %v530_v63   ;;  %v538_v1 = vld [vmem:[%s4297_s12 + $0x88] sm:$0xff]   ;;  %v542_v2 = vld [vmem:[%s4297_s12 + $0x90] sm:$0xff]  }
  0x6e   : > { %535 = vst [vmem:[%s482_s30 + $0x40] sm:$0xff] %v534_v0   ;;  %v546_v3 = vld [vmem:[%s4297_s12 + $0x98] sm:$0xff]   ;;  %539 = vst [vmem:[%s482_s30 + $0x48] sm:$0xff] %v538_v1   ;;  %v550_v4 = vld [vmem:[%s4297_s12 + $0xc0] sm:$0xff]  }
  0x6f   : > { %543 = vst [vmem:[%s482_s30 + $0x50] sm:$0xff] %v542_v2   ;;  %547 = vst [vmem:[%s482_s30 + $0x58] sm:$0xff] %v546_v3   ;;  %v554_v5 = vld [vmem:[%s4297_s12 + $0xc8] sm:$0xff]   ;;  %v558_v6 = vld [vmem:[%s4297_s12 + $0xd0] sm:$0xff]  }
  0x70   : > { %551 = vst [vmem:[%s482_s30 + $0x60] sm:$0xff] %v550_v4   ;;  %555 = vst [vmem:[%s482_s30 + $0x68] sm:$0xff] %v554_v5   ;;  %v562_v7 = vld [vmem:[%s4297_s12 + $0xd8] sm:$0xff]  }
  0x71   : > { %559 = vst [vmem:[%s482_s30 + $0x70] sm:$0xff] %v558_v6   ;;  %563 = vst [vmem:[%s482_s30 + $0x78] sm:$0xff] %v562_v7  }
  0x72 PF: > { %p2866_p12 = scmp.ge.s32.totalorder %s3925_s25, 1  ;;  %p652_p13 = scmp.lt.s32.totalorder %s3925_s25, 7 }
  0x74   : > { %p653_p0 = pnand %p2866_p12, %p652_p13 }
  0x76   : > { %656 = sbr.rel (%p653_p0) target bundleno = 696 (0x2b8), region = 92 }
  0x7b   : > { %s4318_s13 = sand.u32 1, %s3901_s19   ;;  %p707_p1 = scmp.lt.s32.totalorder %s3909_s21, 2 }
  0x7c   : > { %s3465_s14 = smul.u32 960, %s4318_s13  ;;  %s2867_s15 = sshll.u32 %s4318_s13, 7 }
  0x7d   : > { %s2868_s16 = sshll.u32 %s4318_s13, 8  ;;  %s2869_s17 = sshll.u32 %s4318_s13, 6 }
  0x7e   : > { %s708_s26 = scalar_select %p707_p1, %s3909_s21, 2 }
  0x7f   : > { %s4331_s12 = scalar_lea.vmem [#allocation3], %s3465_s14  ;;  %s4333_s30 = scalar_lea.vmem [#allocation4], %s2867_s15 }
  0x80   : > { %s3466_s27 = smul.u32 384, %s708_s26  ;;  %s4335_s0 = scalar_lea.vmem [#allocation5], %s2868_s16 }
  0x81   : > { %s4337_s3 = scalar_lea.vmem [#allocation7], %s2869_s17  ;;  %p2871_p2 = scmp.ne.s32.totalorder %s3909_s21, 0 }
  0x82   : > { %s4329_s11 = scalar_lea.vmem %s4939_s1, %s3466_s27 }
  0x83   : > { %716 = sbr.rel (%p2871_p2) target bundleno = 153 (0x99), region = 104 }
  0x88   : > { %v2872_v8 = vld [vmem:[%s4940_s2] ss:$0 sm:$0xff] }
  0x89   : > { %724 = vst [vmem:[#allocation2 + $0xb0] sm:$0xff] %v2872_v8  ;;  %725 = vst [vmem:[#allocation2] sm:$0xff] %v2872_v8 }
  0x8a   : > { %726 = vst [vmem:[#allocation2 + $0xd8] sm:$0xff] %v2872_v8  ;;  %727 = vst [vmem:[#allocation2 + $0x18] sm:$0xff] %v2872_v8 }
  0x8b   : > { %728 = vst [vmem:[#allocation2 + $0x50] sm:$0xff] %v2872_v8  ;;  %729 = vst [vmem:[#allocation2 + $0x68] sm:$0xff] %v2872_v8 }
  0x8c   : > { %730 = vst [vmem:[#allocation2 + $0x30] sm:$0xff] %v2872_v8  ;;  %731 = vst [vmem:[#allocation2 + $0x48] sm:$0xff] %v2872_v8 }
  0x8d   : > { %732 = vst [vmem:[#allocation2 + $0x80] sm:$0xff] %v2872_v8  ;;  %733 = vst [vmem:[#allocation2 + $0x88] sm:$0xff] %v2872_v8 }
  0x8e   : > { %734 = vst [vmem:[#allocation2 + $0xe8] sm:$0xff] %v2872_v8  ;;  %735 = vst [vmem:[#allocation2 + $0xb8] sm:$0xff] %v2872_v8 }
  0x8f   : > { %736 = vst [vmem:[#allocation2 + $0x60] sm:$0xff] %v2872_v8  ;;  %737 = vst [vmem:[#allocation2 + $0xf0] sm:$0xff] %v2872_v8 }
  0x90   : > { %738 = vst [vmem:[#allocation2 + $0x8] sm:$0xff] %v2872_v8  ;;  %739 = vst [vmem:[#allocation2 + $0x78] sm:$0xff] %v2872_v8 }
  0x91   : > { %740 = vst [vmem:[#allocation2 + $0x38] sm:$0xff] %v2872_v8  ;;  %741 = vst [vmem:[#allocation2 + $0x58] sm:$0xff] %v2872_v8 }
  0x92   : > { %742 = vst [vmem:[#allocation2 + $0x40] sm:$0xff] %v2872_v8  ;;  %743 = vst [vmem:[#allocation2 + $0xc8] sm:$0xff] %v2872_v8 }
  0x93   : > { %744 = vst [vmem:[#allocation2 + $0xe0] sm:$0xff] %v2872_v8  ;;  %745 = vst [vmem:[#allocation2 + $0x90] sm:$0xff] %v2872_v8 }
  0x94   : > { %746 = vst [vmem:[#allocation2 + $0x70] sm:$0xff] %v2872_v8  ;;  %747 = vst [vmem:[#allocation2 + $0xc0] sm:$0xff] %v2872_v8 }
  0x95   : > { %748 = vst [vmem:[#allocation2 + $0xa8] sm:$0xff] %v2872_v8  ;;  %749 = vst [vmem:[#allocation2 + $0xd0] sm:$0xff] %v2872_v8 }
  0x96   : > { %750 = vst [vmem:[#allocation2 + $0x10] sm:$0xff] %v2872_v8  ;;  %751 = vst [vmem:[#allocation2 + $0x28] sm:$0xff] %v2872_v8 }
  0x97   : > { %752 = vst [vmem:[#allocation2 + $0xa0] sm:$0xff] %v2872_v8  ;;  %753 = vst [vmem:[#allocation2 + $0xf8] sm:$0xff] %v2872_v8 }
  0x98   : > { %754 = vst [vmem:[#allocation2 + $0x20] sm:$0xff] %v2872_v8  ;;  %755 = vst [vmem:[#allocation2 + $0x98] sm:$0xff] %v2872_v8 }
  0x99 PF: > { %v3557_v9 = vld [vmem:[%s4329_s11 + $0x78] sm:$0xff]   ;;  %v3559_v11 = vld [vmem:[%s4329_s11 + $0x70] sm:$0xff]   ;;  %v3561_v13 = vld [vmem:[%s4329_s11 + $0x68] sm:$0xff]   ;;  %s2873_s28 = sshll.u32 %s3909_s21, 3  ;;  %p3019_p3 = scmp.ne.s32.totalorder %s3909_s21, 2 }
  0x9a   : > { %v3558_v10 = vld [vmem:[%s4329_s11 + $0x38] sm:$0xff]   ;;  %3111 = vmatprep.subr.bf16.mxu0 %v3557_v9  ;;  %3447 = vmatprep.subr.bf16.mxu1 %v3557_v9  ;;  %v3560_v12 = vld [vmem:[%s4329_s11 + $0x30] sm:$0xff]   ;;  %v3562_v14 = vld [vmem:[%s4329_s11 + $0x28] sm:$0xff]   ;;  %s757_s29 = sshra.s32 %s2873_s28, 3 }
  0x9b   : > { %3112 = vmatpush3.bf16.msra.mxu0 %v3558_v10  ;;  %3455 = vmatpush3.bf16.msra.mxu1 %v3558_v10  ;;  %v3563_v15 = vld [vmem:[%s4329_s11 + $0x60] sm:$0xff]   ;;  %s3029_s14 = smul.u32 24, %s757_s29  ;;  %v3565_v17 = vld [vmem:[%s4329_s11 + $0x58] sm:$0xff]   ;;  %v3567_v19 = vld [vmem:[%s4329_s11 + $0x50] sm:$0xff]  }
  0x9c   : > { %3113 = vmatprep.subr.bf16.mxu0 %v3559_v11  ;;  %3448 = vmatprep.subr.bf16.mxu1 %v3559_v11  ;;  %v3564_v16 = vld [vmem:[%s4329_s11 + $0x20] sm:$0xff]   ;;  %v3566_v18 = vld [vmem:[%s4329_s11 + $0x18] sm:$0xff]   ;;  %v3568_v22 = vld [vmem:[%s4329_s11 + $0x10] sm:$0xff]  }
  0x9d   : > { %s4354_s15 = scalar_lea.vmem %s4331_s12, %s3029_s14 [#allocation3]  ;;  %v3569_v23 = vld [vmem:[%s4329_s11 + $0x48] sm:$0xff]   ;;  %v3571_v25 = vld [vmem:[%s4329_s11 + $0x40] sm:$0xff]   ;;  %v3579_v27 = vld [vmem:[%s4329_s11 + $0xf8] sm:$0xff]  }
  0x9e   : > { %v3575_v20 = vld [vmem:[%s4354_s15 + $0x4] ss:$24 sps:$4 sm:$0xff]   ;;  %v3570_v24 = vld [vmem:[%s4329_s11 + $0x8] sm:$0xff]   ;;  %v3573_v28 = vld [vmem:[%s4354_s15] ss:$24 sps:$4 sm:$0xff]  }
  0x9f   : > { %3114 = vmatpush3.bf16.msra.mxu0 %v3560_v12  ;;  %3456 = vmatpush3.bf16.msra.mxu1 %v3560_v12  ;;  %v3578_v21 = vld [vmem:[%s4354_s15 + $0x1e4] ss:$24 sps:$4 sm:$0xff]   ;;  %v3576_v30 = vld [vmem:[%s4354_s15 + $0x1e0] ss:$24 sps:$4 sm:$0xff]   ;;  %v3583_v33 = vld [vmem:[%s4354_s15 + $0x34] ss:$24 sps:$4 sm:$0xff]  }
  0xa0   : > { %3115 = vmatprep.subr.bf16.mxu0 %v3561_v13  ;;  %3449 = vmatprep.subr.bf16.mxu1 %v3561_v13  ;;  %v3572_v26 = vld [vmem:[%s4329_s11] sm:$0xff]   ;;  %v3581_v29 = vld [vmem:[%s4329_s11 + $0x178] sm:$0xff]   ;;  %v3585_v34 = vld [vmem:[%s4354_s15 + $0x214] ss:$24 sps:$4 sm:$0xff]  }
  0xa1   : > { %1786 = vmatprep.mubr.bf16.mxu0 %v3575_v20  ;;  %1850 = vmatprep.mubr.bf16.mxu1 %v3578_v21  ;;  %v3580_v31 = vld [vmem:[%s4329_s11 + $0xb8] sm:$0xff]   ;;  %v3589_v35 = vld [vmem:[%s4329_s11 + $0xf0] sm:$0xff]   ;;  %v3599_v39 = vld [vmem:[%s4329_s11 + $0xe8] sm:$0xff]  }
  0xa2   : > { %v3582_v32 = vld [vmem:[%s4329_s11 + $0x138] sm:$0xff]   ;;  %v3590_v36 = vld [vmem:[%s4329_s11 + $0xb0] sm:$0xff]   ;;  %v3601_v42 = vld [vmem:[%s4329_s11 + $0x168] sm:$0xff]  }
  0xa3   : > { %3116 = vmatpush3.bf16.msra.mxu0 %v3562_v14  ;;  %3457 = vmatpush3.bf16.msra.mxu1 %v3562_v14  ;;  %v3591_v37 = vld [vmem:[%s4329_s11 + $0x170] sm:$0xff]   ;;  %v3593_v43 = vld [vmem:[%s4354_s15 + $0x64] ss:$24 sps:$4 sm:$0xff]   ;;  %v3600_v45 = vld [vmem:[%s4329_s11 + $0xa8] sm:$0xff]  }
  0xa4   : > { %3117 = vmatprep.subr.bf16.mxu0 %v3563_v15  ;;  %3450 = vmatprep.subr.bf16.mxu1 %v3563_v15  ;;  %v3592_v38 = vld [vmem:[%s4329_s11 + $0x130] sm:$0xff]   ;;  %v3595_v44 = vld [vmem:[%s4354_s15 + $0x244] ss:$24 sps:$4 sm:$0xff]   ;;  %v3602_v46 = vld [vmem:[%s4329_s11 + $0x128] sm:$0xff]  }
  0xa5   : > { %v3587_v40 = vld [vmem:[%s4354_s15 + $0x30] ss:$24 sps:$4 sm:$0xff]   ;;  %v3609_v47 = vld [vmem:[%s4329_s11 + $0xe0] sm:$0xff]   ;;  %v3603_v53 = vld [vmem:[%s4354_s15 + $0x94] ss:$24 sps:$4 sm:$0xff]  }
  0xa6   : > { %v3588_v41 = vld [vmem:[%s4354_s15 + $0x210] ss:$24 sps:$4 sm:$0xff]   ;;  %v3611_v48 = vld [vmem:[%s4329_s11 + $0x160] sm:$0xff]   ;;  %v3605_v54 = vld [vmem:[%s4354_s15 + $0x274] ss:$24 sps:$4 sm:$0xff]  }
  0xa7   : > { %3118 = vmatpush3.bf16.msra.mxu0 %v3564_v16  ;;  %3458 = vmatpush3.bf16.msra.mxu1 %v3564_v16  ;;  %v3597_v49 = vld [vmem:[%s4354_s15 + $0x60] ss:$24 sps:$4 sm:$0xff]   ;;  %v3607_v59 = vld [vmem:[%s4354_s15 + $0x90] ss:$24 sps:$4 sm:$0xff]   ;;  %v3613_v62 = vld [vmem:[%s4354_s15 + $0xf4] ss:$24 sps:$4 sm:$0xff]  }
  0xa8   : > { %3119 = vmatprep.subr.bf16.mxu0 %v3565_v17  ;;  %3451 = vmatprep.subr.bf16.mxu1 %v3565_v17  ;;  %v3598_v50 = vld [vmem:[%s4354_s15 + $0x240] ss:$24 sps:$4 sm:$0xff]   ;;  %v3608_v60 = vld [vmem:[%s4354_s15 + $0x270] ss:$24 sps:$4 sm:$0xff]   ;;  %v3615_v63 = vld [vmem:[%s4354_s15 + $0x2d4] ss:$24 sps:$4 sm:$0xff]  }
  0xa9   : > { %v3610_v51 = vld [vmem:[%s4329_s11 + $0xa0] sm:$0xff]   ;;  %v3619_v55 = vld [vmem:[%s4329_s11 + $0xd8] sm:$0xff]   ;;  %v3629_v61 = vld [vmem:[%s4329_s11 + $0xd0] sm:$0xff]  }
  0xaa   : > { %v3612_v52 = vld [vmem:[%s4329_s11 + $0x120] sm:$0xff]   ;;  %v3620_v56 = vld [vmem:[%s4329_s11 + $0x98] sm:$0xff]   ;;  %v3630_v0 = vld [vmem:[%s4329_s11 + $0x90] sm:$0xff]  }
  0xab   : > { %3120 = vmatpush3.bf16.msra.mxu0 %v3566_v18  ;;  %3459 = vmatpush3.bf16.msra.mxu1 %v3566_v18  ;;  %v3621_v57 = vld [vmem:[%s4329_s11 + $0x158] sm:$0xff]   ;;  %v3631_v1 = vld [vmem:[%s4329_s11 + $0x150] sm:$0xff]   ;;  %v3639_v3 = vld [vmem:[%s4329_s11 + $0xc8] sm:$0xff]  }
  0xac   : > { %3121 = vmatprep.subr.bf16.mxu0 %v3567_v19  ;;  %3452 = vmatprep.subr.bf16.mxu1 %v3567_v19  ;;  %v3622_v58 = vld [vmem:[%s4329_s11 + $0x118] sm:$0xff]   ;;  %v3632_v2 = vld [vmem:[%s4329_s11 + $0x110] sm:$0xff]   ;;  %v3640_v6 = vld [vmem:[%s4329_s11 + $0x88] sm:$0xff]  }
  0xad   : > { %v3617_v4 = vld [vmem:[%s4354_s15 + $0xf0] ss:$24 sps:$4 sm:$0xff]   ;;  %v3623_v7 = vld [vmem:[%s4354_s15 + $0x124] ss:$24 sps:$4 sm:$0xff]   ;;  %v3627_v15 = vld [vmem:[%s4354_s15 + $0x120] ss:$24 sps:$4 sm:$0xff]  }
  0xae   : > { %v3618_v5 = vld [vmem:[%s4354_s15 + $0x2d0] ss:$24 sps:$4 sm:$0xff]   ;;  %v3625_v10 = vld [vmem:[%s4354_s15 + $0x304] ss:$24 sps:$4 sm:$0xff]   ;;  %v3628_v16 = vld [vmem:[%s4354_s15 + $0x300] ss:$24 sps:$4 sm:$0xff]  }
  0xaf   : > { %3122 = vmatpush3.bf16.msra.mxu0 %v3568_v22  ;;  %3460 = vmatpush3.bf16.msra.mxu1 %v3568_v22  ;;  %v3641_v8 = vld [vmem:[%s4329_s11 + $0x148] sm:$0xff]   ;;  %v3649_v11 = vld [vmem:[%s4329_s11 + $0xc0] sm:$0xff]  }
  0xb0   : > { %3123 = vmatprep.subr.bf16.mxu0 %v3569_v23  ;;  %3453 = vmatprep.subr.bf16.mxu1 %v3569_v23  ;;  %v3642_v9 = vld [vmem:[%s4329_s11 + $0x108] sm:$0xff]   ;;  %v3650_v12 = vld [vmem:[%s4329_s11 + $0x80] sm:$0xff]  }
  0xb1   : > { %v3651_v13 = vld [vmem:[%s4329_s11 + $0x140] sm:$0xff]   ;;  %v3633_v17 = vld [vmem:[%s4354_s15 + $0x154] ss:$24 sps:$4 sm:$0xff]   ;;  %v3637_v19 = vld [vmem:[%s4354_s15 + $0x150] ss:$24 sps:$4 sm:$0xff]  }
  0xb2   : > { %v3652_v14 = vld [vmem:[%s4329_s11 + $0x100] sm:$0xff]   ;;  %v3635_v18 = vld [vmem:[%s4354_s15 + $0x334] ss:$24 sps:$4 sm:$0xff]   ;;  %v3638_v20 = vld [vmem:[%s4354_s15 + $0x330] ss:$24 sps:$4 sm:$0xff]  }
  0xb3   : > { %3124 = vmatpush3.bf16.msra.mxu0 %v3570_v24  ;;  %3461 = vmatpush3.bf16.msra.mxu1 %v3570_v24  ;;  %v3643_v21 = vld [vmem:[%s4354_s15 + $0x184] ss:$24 sps:$4 sm:$0xff]   ;;  %v3647_v23 = vld [vmem:[%s4354_s15 + $0x180] ss:$24 sps:$4 sm:$0xff]  }
  0xb4   : > { %3125 = vmatprep.subr.bf16.mxu0 %v3571_v25  ;;  %3454 = vmatprep.subr.bf16.mxu1 %v3571_v25  ;;  %v3645_v22 = vld [vmem:[%s4354_s15 + $0x364] ss:$24 sps:$4 sm:$0xff]   ;;  %v3648_v24 = vld [vmem:[%s4354_s15 + $0x360] ss:$24 sps:$4 sm:$0xff]  }
  0xb5   : > { %v3655_v25 = vld [vmem:[%s4354_s15 + $0xc] ss:$24 sps:$4 sm:$0xff]  }
  0xb7   : > { %3126 = vmatpush3.bf16.msra.mxu0 %v3572_v26  ;;  %3462 = vmatpush3.bf16.msra.mxu1 %v3572_v26  ;;  %v3658_v26 = vld [vmem:[%s4354_s15 + $0x14] ss:$24 sps:$4 sm:$0xff]  }
  0xb8   : > { %3223 = vmatprep.subr.bf16.mxu1 %v3579_v27  ;;  %3335 = vmatprep.subr.bf16.mxu0 %v3581_v29  ;;  %v3653_v27 = vld [vmem:[%s4354_s15 + $0x8] ss:$24 sps:$4 sm:$0xff]   ;;  %v3659_v29 = vld [vmem:[%s4354_s15 + $0x3c] ss:$24 sps:$4 sm:$0xff]  }
  0xba   : > { %1787 = vmatmul.mubr.bf16.vlgmr.msra.gmra.mxu0 %v3573_v28  ;;  %1851 = vmatmul.mubr.bf16.vlgmr.msra.gmra.mxu1 %v3576_v30  ;;  %v3656_v28 = vld [vmem:[%s4354_s15 + $0x10] ss:$24 sps:$4 sm:$0xff]   ;;  %v3661_v30 = vld [vmem:[%s4354_s15 + $0x44] ss:$24 sps:$4 sm:$0xff]  }
  0xbb   : > { %3224 = vmatpush3.bf16.msra.mxu1 %v3580_v31  ;;  %3336 = vmatpush3.bf16.msra.mxu0 %v3582_v32  ;;  %v3663_v31 = vld [vmem:[%s4354_s15 + $0x38] ss:$24 sps:$4 sm:$0xff]  }
  0xbc   : > { %1794 = vmatprep.mubr.bf16.mxu0 %v3583_v33  ;;  %1858 = vmatprep.mubr.bf16.mxu1 %v3585_v34  ;;  %v3664_v32 = vld [vmem:[%s4354_s15 + $0x40] ss:$24 sps:$4 sm:$0xff]   ;;  %v3665_v33 = vld [vmem:[%s4354_s15 + $0x6c] ss:$24 sps:$4 sm:$0xff]  }
  0xbd   : > { %3225 = vmatprep.subr.bf16.mxu1 %v3589_v35  ;;  %3337 = vmatprep.subr.bf16.mxu0 %v3591_v37  ;;  %v3667_v34 = vld [vmem:[%s4354_s15 + $0x74] ss:$24 sps:$4 sm:$0xff]   ;;  %v3669_v35 = vld [vmem:[%s4354_s15 + $0x68] ss:$24 sps:$4 sm:$0xff]  }
  0xbe   : > { %v3671_v37 = vld [vmem:[%s4354_s15 + $0x9c] ss:$24 sps:$4 sm:$0xff]  }
  0xbf   : > { %3226 = vmatpush3.bf16.msra.mxu1 %v3590_v36  ;;  %3338 = vmatpush3.bf16.msra.mxu0 %v3592_v38  ;;  %v3670_v36 = vld [vmem:[%s4354_s15 + $0x70] ss:$24 sps:$4 sm:$0xff]   ;;  %v3673_v38 = vld [vmem:[%s4354_s15 + $0xa4] ss:$24 sps:$4 sm:$0xff]  }
  0xc0   : > { %3227 = vmatprep.subr.bf16.mxu1 %v3599_v39  ;;  %3339 = vmatprep.subr.bf16.mxu0 %v3601_v42  ;;  %v3675_v39 = vld [vmem:[%s4354_s15 + $0x98] ss:$24 sps:$4 sm:$0xff]   ;;  %v3679_v42 = vld [vmem:[%s4354_s15 + $0x104] ss:$24 sps:$4 sm:$0xff]  }
  0xc2   : > { %1795 = vmatmul.mubr.bf16.gmra.mxu0 %v3587_v40  ;;  %1859 = vmatmul.mubr.bf16.gmra.mxu1 %v3588_v41  ;;  %v3676_v40 = vld [vmem:[%s4354_s15 + $0xa0] ss:$24 sps:$4 sm:$0xff]   ;;  %v3677_v41 = vld [vmem:[%s4354_s15 + $0xfc] ss:$24 sps:$4 sm:$0xff]  }
  0xc3   : > { %1802 = vmatprep.mubr.bf16.mxu0 %v3593_v43  ;;  %1866 = vmatprep.mubr.bf16.mxu1 %v3595_v44  ;;  %v3681_v43 = vld [vmem:[%s4354_s15 + $0xf8] ss:$24 sps:$4 sm:$0xff]  }
  0xc4   : > { %3228 = vmatpush3.bf16.msra.mxu1 %v3600_v45  ;;  %3340 = vmatpush3.bf16.msra.mxu0 %v3602_v46  ;;  %v3682_v44 = vld [vmem:[%s4354_s15 + $0x100] ss:$24 sps:$4 sm:$0xff]   ;;  %v3683_v45 = vld [vmem:[%s4354_s15 + $0x12c] ss:$24 sps:$4 sm:$0xff]  }
  0xc5   : > { %3229 = vmatprep.subr.bf16.mxu1 %v3609_v47  ;;  %3341 = vmatprep.subr.bf16.mxu0 %v3611_v48  ;;  %v3685_v46 = vld [vmem:[%s4354_s15 + $0x134] ss:$24 sps:$4 sm:$0xff]   ;;  %v3687_v47 = vld [vmem:[%s4354_s15 + $0x128] ss:$24 sps:$4 sm:$0xff]  }
  0xc6   : > { %v3688_v48 = vld [vmem:[%s4354_s15 + $0x130] ss:$24 sps:$4 sm:$0xff]  }
  0xc8   : > { %3230 = vmatpush3.bf16.msra.mxu1 %v3610_v51  ;;  %3342 = vmatpush3.bf16.msra.mxu0 %v3612_v52  ;;  %v3693_v51 = vld [vmem:[%s4354_s15 + $0x158] ss:$24 sps:$4 sm:$0xff]  }
  0xc9   : > { %3231 = vmatprep.subr.bf16.mxu1 %v3619_v55  ;;  %3343 = vmatprep.subr.bf16.mxu0 %v3621_v57  ;;  %v3694_v52 = vld [vmem:[%s4354_s15 + $0x160] ss:$24 sps:$4 sm:$0xff]   ;;  %v3701_v57 = vld [vmem:[%s4354_s15 + $0x1ec] ss:$24 sps:$4 sm:$0xff]  }
  0xca   : > { %1803 = vmatmul.mubr.bf16.gmra.mxu0 %v3597_v49  ;;  %1867 = vmatmul.mubr.bf16.gmra.mxu1 %v3598_v50  ;;  %v3689_v49 = vld [vmem:[%s4354_s15 + $0x15c] ss:$24 sps:$4 sm:$0xff]   ;;  %v3699_v55 = vld [vmem:[%s4354_s15 + $0x188] ss:$24 sps:$4 sm:$0xff]  }
  0xcb   : > { %1810 = vmatprep.mubr.bf16.mxu0 %v3603_v53  ;;  %1874 = vmatprep.mubr.bf16.mxu1 %v3605_v54  ;;  %v3691_v50 = vld [vmem:[%s4354_s15 + $0x164] ss:$24 sps:$4 sm:$0xff]   ;;  %v3697_v54 = vld [vmem:[%s4354_s15 + $0x194] ss:$24 sps:$4 sm:$0xff]  }
  0xcc   : > { %3232 = vmatpush3.bf16.msra.mxu1 %v3620_v56  ;;  %3344 = vmatpush3.bf16.msra.mxu0 %v3622_v58  ;;  %v3695_v53 = vld [vmem:[%s4354_s15 + $0x18c] ss:$24 sps:$4 sm:$0xff]   ;;  %v3700_v56 = vld [vmem:[%s4354_s15 + $0x190] ss:$24 sps:$4 sm:$0xff]  }
  0xcd   : > { %3233 = vmatprep.subr.bf16.mxu1 %v3629_v61  ;;  %3345 = vmatprep.subr.bf16.mxu0 %v3631_v1  ;;  %v3703_v58 = vld [vmem:[%s4354_s15 + $0x1f4] ss:$24 sps:$4 sm:$0xff]  }
  0xce   : > { %v3707_v61 = vld [vmem:[%s4354_s15 + $0x21c] ss:$24 sps:$4 sm:$0xff]   ;;  %v3713_v1 = vld [vmem:[%s4354_s15 + $0x24c] ss:$24 sps:$4 sm:$0xff]  }
  0xd0   : > { %3234 = vmatpush3.bf16.msra.mxu1 %v3630_v0  ;;  %3346 = vmatpush3.bf16.msra.mxu0 %v3632_v2  ;;  %v3712_v0 = vld [vmem:[%s4354_s15 + $0x220] ss:$24 sps:$4 sm:$0xff]   ;;  %v3715_v2 = vld [vmem:[%s4354_s15 + $0x254] ss:$24 sps:$4 sm:$0xff]  }
  0xd1   : > { %3235 = vmatprep.subr.bf16.mxu1 %v3639_v3  ;;  %3347 = vmatprep.subr.bf16.mxu0 %v3641_v8  ;;  %v3717_v3 = vld [vmem:[%s4354_s15 + $0x248] ss:$24 sps:$4 sm:$0xff]  }
  0xd2   : > { %1811 = vmatmul.mubr.bf16.gmra.mxu0 %v3607_v59  ;;  %1875 = vmatmul.mubr.bf16.gmra.mxu1 %v3608_v60  ;;  %v3705_v59 = vld [vmem:[%s4354_s15 + $0x1e8] ss:$24 sps:$4 sm:$0xff]  }
  0xd3   : > { %1818 = vmatprep.mubr.bf16.mxu0 %v3613_v62  ;;  %1882 = vmatprep.mubr.bf16.mxu1 %v3615_v63  ;;  %v3706_v60 = vld [vmem:[%s4354_s15 + $0x1f0] ss:$24 sps:$4 sm:$0xff]   ;;  %v3709_v62 = vld [vmem:[%s4354_s15 + $0x224] ss:$24 sps:$4 sm:$0xff]   ;;  %v3724_v8 = vld [vmem:[%s4354_s15 + $0x280] ss:$24 sps:$4 sm:$0xff]  }
  0xd4   : > { %3236 = vmatpush3.bf16.msra.mxu1 %v3640_v6  ;;  %3348 = vmatpush3.bf16.msra.mxu0 %v3642_v9  ;;  %v3711_v63 = vld [vmem:[%s4354_s15 + $0x218] ss:$24 sps:$4 sm:$0xff]   ;;  %v3721_v6 = vld [vmem:[%s4354_s15 + $0x284] ss:$24 sps:$4 sm:$0xff]  }
  0xd5   : > { %3237 = vmatprep.subr.bf16.mxu1 %v3649_v11  ;;  %3349 = vmatprep.subr.bf16.mxu0 %v3651_v13  ;;  %v3725_v9 = vld [vmem:[%s4354_s15 + $0x2dc] ss:$24 sps:$4 sm:$0xff]   ;;  %v3729_v11 = vld [vmem:[%s4354_s15 + $0x2d8] ss:$24 sps:$4 sm:$0xff]   ;;  %v3731_v13 = vld [vmem:[%s4354_s15 + $0x30c] ss:$24 sps:$4 sm:$0xff]  }
  0xd8   : > { %3238 = vmatpush3.bf16.msra.mxu1 %v3650_v12  ;;  %3350 = vmatpush3.bf16.msra.mxu0 %v3652_v14  ;;  %v3730_v12 = vld [vmem:[%s4354_s15 + $0x2e0] ss:$24 sps:$4 sm:$0xff]   ;;  %v3733_v14 = vld [vmem:[%s4354_s15 + $0x314] ss:$24 sps:$4 sm:$0xff]  }
  0xda   : > { %1819 = vmatmul.mubr.bf16.gmra.mxu0 %v3617_v4  ;;  %1883 = vmatmul.mubr.bf16.gmra.mxu1 %v3618_v5  ;;  %v3718_v4 = vld [vmem:[%s4354_s15 + $0x250] ss:$24 sps:$4 sm:$0xff]   ;;  %v3719_v5 = vld [vmem:[%s4354_s15 + $0x27c] ss:$24 sps:$4 sm:$0xff]  }
  0xdb   : > { %1826 = vmatprep.mubr.bf16.mxu0 %v3623_v7  ;;  %1890 = vmatprep.mubr.bf16.mxu1 %v3625_v10  ;;  %v3723_v7 = vld [vmem:[%s4354_s15 + $0x278] ss:$24 sps:$4 sm:$0xff]   ;;  %v3727_v10 = vld [vmem:[%s4354_s15 + $0x2e4] ss:$24 sps:$4 sm:$0xff]  }
  0xe2   : > { %1827 = vmatmul.mubr.bf16.gmra.mxu0 %v3627_v15  ;;  %1891 = vmatmul.mubr.bf16.gmra.mxu1 %v3628_v16  ;;  %v3735_v15 = vld [vmem:[%s4354_s15 + $0x308] ss:$24 sps:$4 sm:$0xff]  }
  0xe3   : > { %1834 = vmatprep.mubr.bf16.mxu0 %v3633_v17  ;;  %1898 = vmatprep.mubr.bf16.mxu1 %v3635_v18  ;;  %v3736_v16 = vld [vmem:[%s4354_s15 + $0x310] ss:$24 sps:$4 sm:$0xff]   ;;  %v3737_v17 = vld [vmem:[%s4354_s15 + $0x33c] ss:$24 sps:$4 sm:$0xff]  }
  0xe4   : > { %v3739_v18 = vld [vmem:[%s4354_s15 + $0x344] ss:$24 sps:$4 sm:$0xff]  }
  0xea   : > { %1835 = vmatmul.mubr.bf16.gmra.mxu0 %v3637_v19  ;;  %1899 = vmatmul.mubr.bf16.gmra.mxu1 %v3638_v20  ;;  %v3741_v19 = vld [vmem:[%s4354_s15 + $0x338] ss:$24 sps:$4 sm:$0xff]  }
  0xeb   : > { %1842 = vmatprep.mubr.bf16.mxu0 %v3643_v21  ;;  %1906 = vmatprep.mubr.bf16.mxu1 %v3645_v22  ;;  %v3742_v20 = vld [vmem:[%s4354_s15 + $0x340] ss:$24 sps:$4 sm:$0xff]   ;;  %v3743_v21 = vld [vmem:[%s4354_s15 + $0x36c] ss:$24 sps:$4 sm:$0xff]  }
  0xec   : > { %v3745_v22 = vld [vmem:[%s4354_s15 + $0x374] ss:$24 sps:$4 sm:$0xff]  }
  0xf2   : > { %1843 = vmatmul.mubr.bf16.gmra.mxu0 %v3647_v23  ;;  %1907 = vmatmul.mubr.bf16.gmra.mxu1 %v3648_v24  ;;  %v3747_v23 = vld [vmem:[%s4354_s15 + $0x368] ss:$24 sps:$4 sm:$0xff]  }
  0xf3   : > { %1947 = vmatprep.mubr.bf16.mxu1 %v3655_v25  ;;  %2108 = vmatprep.mubr.bf16.mxu0 %v3658_v26  ;;  %v3748_v24 = vld [vmem:[%s4354_s15 + $0x370] ss:$24 sps:$4 sm:$0xff]  }
  0xfa   : > { %1948 = vmatmul.mubr.bf16.vlgmr.msra.gmra.mxu1 %v3653_v27  ;;  %2109 = vmatmul.mubr.bf16.vlgmr.msra.gmra.mxu0 %v3656_v28 }
  0xfb   : > { %1955 = vmatprep.mubr.bf16.mxu1 %v3659_v29  ;;  %2116 = vmatprep.mubr.bf16.mxu0 %v3661_v30 }
 0x102   : > { %1956 = vmatmul.mubr.bf16.gmra.mxu1 %v3663_v31  ;;  %2117 = vmatmul.mubr.bf16.gmra.mxu0 %v3664_v32 }
 0x103   : > { %1963 = vmatprep.mubr.bf16.mxu1 %v3665_v33  ;;  %2124 = vmatprep.mubr.bf16.mxu0 %v3667_v34 }
 0x10a   : > { %1964 = vmatmul.mubr.bf16.gmra.mxu1 %v3669_v35  ;;  %2125 = vmatmul.mubr.bf16.gmra.mxu0 %v3670_v36 }
 0x10b   : > { %1971 = vmatprep.mubr.bf16.mxu1 %v3671_v37  ;;  %2132 = vmatprep.mubr.bf16.mxu0 %v3673_v38 }
 0x112   : > { %1972 = vmatmul.mubr.bf16.gmra.mxu1 %v3675_v39  ;;  %2133 = vmatmul.mubr.bf16.gmra.mxu0 %v3676_v40 }
 0x113   : > { %1979 = vmatprep.mubr.bf16.mxu1 %v3677_v41  ;;  %2140 = vmatprep.mubr.bf16.mxu0 %v3679_v42 }
 0x11a   : > { %1980 = vmatmul.mubr.bf16.gmra.mxu1 %v3681_v43  ;;  %2141 = vmatmul.mubr.bf16.gmra.mxu0 %v3682_v44 }
 0x11b   : > { %1987 = vmatprep.mubr.bf16.mxu1 %v3683_v45  ;;  %2148 = vmatprep.mubr.bf16.mxu0 %v3685_v46 }
 0x122   : > { %1988 = vmatmul.mubr.bf16.gmra.mxu1 %v3687_v47  ;;  %2149 = vmatmul.mubr.bf16.gmra.mxu0 %v3688_v48 }
 0x123   : > { %1995 = vmatprep.mubr.bf16.mxu1 %v3689_v49  ;;  %2156 = vmatprep.mubr.bf16.mxu0 %v3691_v50 }
 0x12a   : > { %1996 = vmatmul.mubr.bf16.gmra.mxu1 %v3693_v51  ;;  %2157 = vmatmul.mubr.bf16.gmra.mxu0 %v3694_v52 }
 0x12b   : > { %2003 = vmatprep.mubr.bf16.mxu1 %v3695_v53  ;;  %2164 = vmatprep.mubr.bf16.mxu0 %v3697_v54 }
 0x132   : > { %2004 = vmatmul.mubr.bf16.gmra.mxu1 %v3699_v55  ;;  %2165 = vmatmul.mubr.bf16.gmra.mxu0 %v3700_v56 }
 0x133   : > { %2011 = vmatprep.mubr.bf16.mxu1 %v3701_v57  ;;  %2172 = vmatprep.mubr.bf16.mxu0 %v3703_v58 }
 0x13a   : > { %2012 = vmatmul.mubr.bf16.gmra.mxu1 %v3705_v59  ;;  %2173 = vmatmul.mubr.bf16.gmra.mxu0 %v3706_v60 }
 0x13b   : > { %2019 = vmatprep.mubr.bf16.mxu1 %v3707_v61  ;;  %2180 = vmatprep.mubr.bf16.mxu0 %v3709_v62 }
 0x142   : > { %2020 = vmatmul.mubr.bf16.gmra.mxu1 %v3711_v63  ;;  %2181 = vmatmul.mubr.bf16.gmra.mxu0 %v3712_v0 }
 0x143   : > { %2027 = vmatprep.mubr.bf16.mxu1 %v3713_v1  ;;  %2188 = vmatprep.mubr.bf16.mxu0 %v3715_v2 }
 0x14a   : > { %2028 = vmatmul.mubr.bf16.gmra.mxu1 %v3717_v3  ;;  %2189 = vmatmul.mubr.bf16.gmra.mxu0 %v3718_v4 }
 0x14b   : > { %2035 = vmatprep.mubr.bf16.mxu1 %v3719_v5  ;;  %2196 = vmatprep.mubr.bf16.mxu0 %v3721_v6 }
 0x152   : > { %2036 = vmatmul.mubr.bf16.gmra.mxu1 %v3723_v7  ;;  %2197 = vmatmul.mubr.bf16.gmra.mxu0 %v3724_v8 }
 0x153   : > { %2043 = vmatprep.mubr.bf16.mxu1 %v3725_v9  ;;  %2204 = vmatprep.mubr.bf16.mxu0 %v3727_v10 }
 0x15a   : > { %2044 = vmatmul.mubr.bf16.gmra.mxu1 %v3729_v11  ;;  %2205 = vmatmul.mubr.bf16.gmra.mxu0 %v3730_v12 }
 0x15b   : > { %2051 = vmatprep.mubr.bf16.mxu1 %v3731_v13  ;;  %2212 = vmatprep.mubr.bf16.mxu0 %v3733_v14 }
 0x162   : > { %2052 = vmatmul.mubr.bf16.gmra.mxu1 %v3735_v15  ;;  %2213 = vmatmul.mubr.bf16.gmra.mxu0 %v3736_v16 }
 0x163   : > { %2059 = vmatprep.mubr.bf16.mxu1 %v3737_v17  ;;  %2220 = vmatprep.mubr.bf16.mxu0 %v3739_v18 }
 0x16a   : > { %2060 = vmatmul.mubr.bf16.gmra.mxu1 %v3741_v19  ;;  %2221 = vmatmul.mubr.bf16.gmra.mxu0 %v3742_v20 }
 0x16b   : > { %2067 = vmatprep.mubr.bf16.mxu1 %v3743_v21  ;;  %2228 = vmatprep.mubr.bf16.mxu0 %v3745_v22 }
 0x172   : > { %2068 = vmatmul.mubr.bf16.gmra.mxu1 %v3747_v23  ;;  %2229 = vmatmul.mubr.bf16.gmra.mxu0 %v3748_v24 }
 0x17a   : > { %v4491_v25 = vpop.f32.mrf.mxu0  ;;  %v3175_v26 = vpop.f32.mrf.mxu1 }
 0x17c   : > { %v4493_v27 = vpop.f32.mrf.mxu0  ;;  %v3176_v28 = vpop.f32.mrf.mxu1 }
 0x17d   : > { %v4495_v29 = vadd.f32 %v3176_v28, %v3175_v26 }
 0x17e   : > { %v4497_v30 = vpop.f32.mrf.mxu0  ;;  %v3178_v31 = vpop.f32.mrf.mxu1 }
 0x180   : > { %v4499_v32 = vpop.f32.mrf.mxu0  ;;  %v3179_v33 = vpop.f32.mrf.mxu1 }
 0x181   : > { %v4501_v34 = vadd.f32 %v3179_v33, %v3178_v31 }
 0x182   : > { %v4503_v35 = vpop.f32.mrf.mxu0  ;;  %v3181_v36 = vpop.f32.mrf.mxu1 }
 0x184   : > { %v4505_v37 = vpop.f32.mrf.mxu0  ;;  %v3182_v38 = vpop.f32.mrf.mxu1 }
 0x185   : > { %v4507_v39 = vadd.f32 %v3182_v38, %v3181_v36 }
 0x186   : > { %v4509_v40 = vpop.f32.mrf.mxu0  ;;  %v3184_v41 = vpop.f32.mrf.mxu1 }
 0x188   : > { %v4511_v42 = vpop.f32.mrf.mxu0  ;;  %v3185_v43 = vpop.f32.mrf.mxu1 }
 0x189   : > { %v4513_v44 = vadd.f32 %v3185_v43, %v3184_v41 }
 0x18a   : > { %v4515_v45 = vpop.f32.mrf.mxu0  ;;  %v3187_v46 = vpop.f32.mrf.mxu1 }
 0x18c   : > { %v4517_v47 = vpop.f32.mrf.mxu0  ;;  %v3188_v48 = vpop.f32.mrf.mxu1 }
 0x18d   : > { %v4519_v49 = vadd.f32 %v3188_v48, %v3187_v46 }
 0x18e   : > { %v4521_v50 = vpop.f32.mrf.mxu0  ;;  %v3190_v51 = vpop.f32.mrf.mxu1 }
 0x190   : > { %v4523_v52 = vpop.f32.mrf.mxu0  ;;  %v3191_v53 = vpop.f32.mrf.mxu1 }
 0x191   : > { %v4525_v54 = vadd.f32 %v3191_v53, %v3190_v51 }
 0x192   : > { %v4527_v55 = vpop.f32.mrf.mxu0  ;;  %v3193_v56 = vpop.f32.mrf.mxu1 }
 0x194   : > { %v4529_v57 = vpop.f32.mrf.mxu0  ;;  %v3194_v58 = vpop.f32.mrf.mxu1 }
 0x195   : > { %v4531_v59 = vadd.f32 %v3194_v58, %v3193_v56 }
 0x196   : > { %v4533_v60 = vpop.f32.mrf.mxu0  ;;  %v3196_v61 = vpop.f32.mrf.mxu1 }
 0x198   : > { %v4535_v62 = vpop.f32.mrf.mxu0  ;;  %v3197_v63 = vpop.f32.mrf.mxu1 }
 0x199   : > { %v4537_v0 = vadd.f32 %v3197_v63, %v3196_v61 }
 0x19a   : > { %v4539_v1 = vpop.f32.mrf.mxu0  ;;  %v3199_v2 = vpop.f32.mrf.mxu1 }
 0x19c   : > { %v4541_v3 = vpop.f32.mrf.mxu0  ;;  %v3200_v4 = vpop.f32.mrf.mxu1 }
 0x19d   : > { %v4543_v5 = vadd.f32 %v3200_v4, %v3199_v2 }
 0x19e   : > { %v4545_v6 = vpop.f32.mrf.mxu0  ;;  %v3202_v7 = vpop.f32.mrf.mxu1 }
 0x1a0   : > { %v4547_v8 = vpop.f32.mrf.mxu0  ;;  %v3203_v9 = vpop.f32.mrf.mxu1 }
 0x1a1   : > { %v4549_v10 = vadd.f32 %v3203_v9, %v3202_v7 }
 0x1a2   : > { %v4551_v11 = vpop.f32.mrf.mxu0  ;;  %v3205_v12 = vpop.f32.mrf.mxu1 }
 0x1a4   : > { %v4553_v13 = vpop.f32.mrf.mxu0  ;;  %v3206_v14 = vpop.f32.mrf.mxu1 }
 0x1a5   : > { %v4555_v15 = vadd.f32 %v3206_v14, %v3205_v12  ;;  %v3129_v12 = vadd.f32 %v4493_v27, %v4491_v25 }
 0x1a6   : > { %v4557_v16 = vpop.f32.mrf.mxu0  ;;  %v3208_v17 = vpop.f32.mrf.mxu1 }
 0x1a7   : > { %4954 = vst [vmem:[#allocation15_spill] sm:$0xff] %v4555_v15  ;;  %v859_v15 = vld [vmem:[#allocation2] sm:$0xff] }
 0x1a8   : > { %v4559_v18 = vpop.f32.mrf.mxu0  ;;  %v3209_v19 = vpop.f32.mrf.mxu1 }
 0x1a9   : > { %v4561_v20 = vadd.f32 %v3209_v19, %v3208_v17 }
 0x1aa   : > { %v4563_v21 = vpop.f32.mrf.mxu0  ;;  %v3211_v22 = vpop.f32.mrf.mxu1 }
 0x1ab   : > { %4955 = vst [vmem:[#allocation16_spill] sm:$0xff] %v4561_v20 }
 0x1ac   : > { %v4565_v23 = vpop.f32.mrf.mxu0  ;;  %v3212_v24 = vpop.f32.mrf.mxu1 }
 0x1ad   : > { %v4567_v26 = vadd.f32 %v3212_v24, %v3211_v22 }
 0x1ae   : > { %v4569_v28 = vpop.f32.mrf.mxu0  ;;  %v3214_v31 = vpop.f32.mrf.mxu1 }
 0x1af   : > { %4956 = vst [vmem:[#allocation17_spill] sm:$0xff] %v4567_v26 }
 0x1b0   : > { %v4571_v33 = vpop.f32.mrf.mxu0  ;;  %v3215_v36 = vpop.f32.mrf.mxu1 }
 0x1b1   : > { %v4573_v38 = vadd.f32 %v3215_v36, %v3214_v31  ;;  %v858_v31 = vld [vmem:[#allocation2 + $0xb0] sm:$0xff] }
 0x1b2   : > { %v4575_v41 = vpop.f32.mrf.mxu0  ;;  %v3217_v43 = vpop.f32.mrf.mxu1 }
 0x1b3   : > { %4957 = vst [vmem:[#allocation18_spill] sm:$0xff] %v4573_v38 }
 0x1b4   : > { %v4577_v46 = vpop.f32.mrf.mxu0  ;;  %v3218_v48 = vpop.f32.mrf.mxu1 }
 0x1b5   : > { %v4579_v51 = vadd.f32 %v3218_v48, %v3217_v43  ;;  %v3132_v48 = vadd.f32 %v4499_v32, %v4497_v30 }
 0x1b6   : > { %v4581_v53 = vpop.f32.mrf.mxu0  ;;  %v3220_v56 = vpop.f32.mrf.mxu1 }
 0x1b7   : > { %4958 = vst [vmem:[#allocation19_spill] sm:$0xff] %v4579_v51 }
 0x1b8   : > { %v4583_v58 = vpop.f32.mrf.mxu0  ;;  %v3221_v61 = vpop.f32.mrf.mxu1 }
 0x1b9   : > { %v4585_v63 = vadd.f32 %v3221_v61, %v3220_v56 }
 0x1ba   : > { %v3239_v2 = vpop.f32.mrf.mxu1  ;;  %v3351_v4 = vpop.f32.mrf.mxu0 }
 0x1bb   : > { %4959 = vst [vmem:[#allocation20_spill] sm:$0xff] %v4585_v63 }
 0x1bc   : > { %v3240_v7 = vpop.f32.mrf.mxu1  ;;  %v3352_v9 = vpop.f32.mrf.mxu0 }
 0x1bd   : > { %v3241_v14 = vadd.f32 %v3240_v7, %v3239_v2  ;;  %v3353_v24 = vadd.f32 %v3352_v9, %v3351_v4  ;;  %v3135_v2 = vadd.f32 %v4505_v37, %v4503_v35 }
 0x1be   : > { %v3242_v17 = vpop.f32.mrf.mxu1  ;;  %v3354_v19 = vpop.f32.mrf.mxu0 }
 0x1bf   : > { %v1950_v22 = vadd.f32 %v3241_v14, %v3129_v12 }
 0x1c0   : > { %v3243_v36 = vpop.f32.mrf.mxu1  ;;  %v3355_v43 = vpop.f32.mrf.mxu0 }
 0x1c1   : > { %v2111_v56 = vadd.f32 %v3353_v24, %v1950_v22  ;;  %v3244_v61 = vadd.f32 %v3243_v36, %v3242_v17  ;;  %v3356_v20 = vadd.f32 %v3355_v43, %v3354_v19  ;;  %v860_v17 = vld [vmem:[#allocation2 + $0xd8] sm:$0xff]  ;;  %v3138_v19 = vadd.f32 %v4511_v42, %v4509_v40 }
 0x1c2   : > { %v3245_v63 = vpop.f32.mrf.mxu1  ;;  %v3357_v51 = vpop.f32.mrf.mxu0 }
 0x1c3   : > { %v2237_v38 = vadd.f32 %v2111_v56, %v858_v31  ;;  %v1953_v26 = vadd.f32 %v3244_v61, %v3132_v48 }
 0x1c4   : > { %v3246_v25 = vpop.f32.mrf.mxu1  ;;  %v3358_v27 = vpop.f32.mrf.mxu0 }
 0x1c5   : > { %2269 = vst [vmem:[#allocation2 + $0xb0] sm:$0xff] %v2237_v38  ;;  %v2114_v4 = vadd.f32 %v3356_v20, %v1953_v26  ;;  %v3247_v7 = vadd.f32 %v3246_v25, %v3245_v63  ;;  %v3359_v32 = vadd.f32 %v3358_v27, %v3357_v51  ;;  %v861_v26 = vld [vmem:[#allocation2 + $0x18] sm:$0xff] }
 0x1c6   : > { %v3248_v9 = vpop.f32.mrf.mxu1  ;;  %v3360_v12 = vpop.f32.mrf.mxu0 }
 0x1c7   : > { %v2238_v14 = vadd.f32 %v2114_v4, %v859_v15  ;;  %v1958_v30 = vadd.f32 %v3247_v7, %v3135_v2  ;;  %v3141_v15 = vadd.f32 %v4517_v47, %v4515_v45  ;;  %v862_v2 = vld [vmem:[#allocation2 + $0x50] sm:$0xff] }
 0x1c8   : > { %v3249_v22 = vpop.f32.mrf.mxu1  ;;  %v3361_v24 = vpop.f32.mrf.mxu0 }
 0x1c9   : > { %2270 = vst [vmem:[#allocation2] sm:$0xff] %v2238_v14  ;;  %v2119_v31 = vadd.f32 %v3359_v32, %v1958_v30  ;;  %v3250_v36 = vadd.f32 %v3249_v22, %v3248_v9  ;;  %v3362_v20 = vadd.f32 %v3361_v24, %v3360_v12  ;;  %v3144_v9 = vadd.f32 %v4523_v52, %v4521_v50  ;;  %v863_v22 = vld [vmem:[#allocation2 + $0x68] sm:$0xff] }
 0x1ca   : > { %v3251_v43 = vpop.f32.mrf.mxu1  ;;  %v3363_v48 = vpop.f32.mrf.mxu0 }
 0x1cb   : > { %v2239_v35 = vadd.f32 %v2119_v31, %v860_v17  ;;  %v1961_v37 = vadd.f32 %v3250_v36, %v3138_v19  ;;  %v3147_v31 = vadd.f32 %v4529_v57, %v4527_v55 }
 0x1cc   : > { %v3252_v38 = vpop.f32.mrf.mxu1  ;;  %v3364_v63 = vpop.f32.mrf.mxu0 }
 0x1cd   : > { %2271 = vst [vmem:[#allocation2 + $0xd8] sm:$0xff] %v2239_v35  ;;  %v2122_v51 = vadd.f32 %v3362_v20, %v1961_v37  ;;  %v3253_v56 = vadd.f32 %v3252_v38, %v3251_v43  ;;  %v3365_v27 = vadd.f32 %v3364_v63, %v3363_v48  ;;  %v864_v20 = vld [vmem:[#allocation2 + $0x30] sm:$0xff]  ;;  %v3150_v63 = vadd.f32 %v4535_v62, %v4533_v60 }
 0x1ce   : > { %v3254_v61 = vpop.f32.mrf.mxu1  ;;  %v3366_v25 = vpop.f32.mrf.mxu0 }
 0x1cf   : > { %v2240_v40 = vadd.f32 %v2122_v51, %v861_v26  ;;  %v1966_v42 = vadd.f32 %v3253_v56, %v3141_v15 }
 0x1d0   : > { %v3255_v4 = vpop.f32.mrf.mxu1  ;;  %v3367_v7 = vpop.f32.mrf.mxu0 }
 0x1d1   : > { %2272 = vst [vmem:[#allocation2 + $0x18] sm:$0xff] %v2240_v40  ;;  %v2127_v12 = vadd.f32 %v3365_v27, %v1966_v42  ;;  %v3256_v14 = vadd.f32 %v3255_v4, %v3254_v61  ;;  %v3368_v17 = vadd.f32 %v3367_v7, %v3366_v25  ;;  %v865_v40 = vld [vmem:[#allocation2 + $0x48] sm:$0xff] }
 0x1d2   : > { %v3257_v30 = vpop.f32.mrf.mxu1  ;;  %v3369_v32 = vpop.f32.mrf.mxu0 }
 0x1d3   : > { %v2241_v45 = vadd.f32 %v2127_v12, %v862_v2  ;;  %v1969_v47 = vadd.f32 %v3256_v14, %v3144_v9  ;;  %v3153_v2 = vadd.f32 %v4541_v3, %v4539_v1 }
 0x1d4   : > { %v3258_v24 = vpop.f32.mrf.mxu1  ;;  %v3370_v19 = vpop.f32.mrf.mxu0 }
 0x1d5   : > { %2273 = vst [vmem:[#allocation2 + $0x50] sm:$0xff] %v2241_v45  ;;  %v2130_v36 = vadd.f32 %v3368_v17, %v1969_v47  ;;  %v3259_v43 = vadd.f32 %v3258_v24, %v3257_v30  ;;  %v3371_v37 = vadd.f32 %v3370_v19, %v3369_v32  ;;  %v866_v30 = vld [vmem:[#allocation2 + $0x80] sm:$0xff]  ;;  %v3156_v47 = vadd.f32 %v4547_v8, %v4545_v6 }
 0x1d6   : > { %v3260_v48 = vpop.f32.mrf.mxu1  ;;  %v3372_v35 = vpop.f32.mrf.mxu0 }
 0x1d7   : > { %v2242_v50 = vadd.f32 %v2130_v36, %v863_v22  ;;  %v1974_v52 = vadd.f32 %v3259_v43, %v3147_v31  ;;  %v867_v36 = vld [vmem:[#allocation2 + $0x88] sm:$0xff] }
 0x1d8   : > { %v3261_v26 = vpop.f32.mrf.mxu1  ;;  %v3373_v38 = vpop.f32.mrf.mxu0 }
 0x1d9   : > { %2274 = vst [vmem:[#allocation2 + $0x68] sm:$0xff] %v2242_v50  ;;  %v2135_v15 = vadd.f32 %v3371_v37, %v1974_v52  ;;  %v3262_v51 = vadd.f32 %v3261_v26, %v3260_v48  ;;  %v3374_v25 = vadd.f32 %v3373_v38, %v3372_v35  ;;  %v3159_v35 = vadd.f32 %v4553_v13, %v4551_v11  ;;  %v868_v38 = vld [vmem:[#allocation2 + $0xe8] sm:$0xff] }
 0x1da   : > { %v3263_v56 = vpop.f32.mrf.mxu1  ;;  %v3375_v61 = vpop.f32.mrf.mxu0 }
 0x1db   : > { %v2243_v55 = vadd.f32 %v2135_v15, %v864_v20  ;;  %v1977_v57 = vadd.f32 %v3262_v51, %v3150_v63  ;;  %v3162_v51 = vadd.f32 %v4559_v18, %v4557_v16 }
 0x1dc   : > { %v3264_v42 = vpop.f32.mrf.mxu1  ;;  %v3376_v27 = vpop.f32.mrf.mxu0 }
 0x1dd   : > { %2275 = vst [vmem:[#allocation2 + $0x30] sm:$0xff] %v2243_v55  ;;  %v2138_v4 = vadd.f32 %v3374_v25, %v1977_v57  ;;  %v3265_v7 = vadd.f32 %v3264_v42, %v3263_v56  ;;  %v3377_v14 = vadd.f32 %v3376_v27, %v3375_v61 }
 0x1de   : > { %v3266_v9 = vpop.f32.mrf.mxu1  ;;  %v3378_v12 = vpop.f32.mrf.mxu0 }
 0x1df   : > { %v2244_v60 = vadd.f32 %v2138_v4, %v865_v40  ;;  %v1982_v62 = vadd.f32 %v3265_v7, %v3153_v2  ;;  %v869_v40 = vld [vmem:[#allocation2 + $0xb8] sm:$0xff]  ;;  %v3165_v2 = vadd.f32 %v4565_v23, %v4563_v21 }
 0x1e0   : > { %v3267_v32 = vpop.f32.mrf.mxu1  ;;  %v3379_v45 = vpop.f32.mrf.mxu0 }
 0x1e1   : > { %2276 = vst [vmem:[#allocation2 + $0x48] sm:$0xff] %v2244_v60  ;;  %v2143_v17 = vadd.f32 %v3377_v14, %v1982_v62  ;;  %v3268_v22 = vadd.f32 %v3267_v32, %v3266_v9  ;;  %v3380_v31 = vadd.f32 %v3379_v45, %v3378_v12  ;;  %v870_v62 = vld [vmem:[#allocation2 + $0x60] sm:$0xff]  ;;  %v3168_v32 = vadd.f32 %v4571_v33, %v4569_v28 }
 0x1e2   : > { %v3269_v24 = vpop.f32.mrf.mxu1  ;;  %v3381_v19 = vpop.f32.mrf.mxu0 }
 0x1e3   : > { %v2245_v1 = vadd.f32 %v2143_v17, %v866_v30  ;;  %v1985_v3 = vadd.f32 %v3268_v22, %v3156_v47 }
 0x1e4   : > { %v3270_v43 = vpop.f32.mrf.mxu1  ;;  %v3382_v48 = vpop.f32.mrf.mxu0 }
 0x1e5   : > { %2277 = vst [vmem:[#allocation2 + $0x80] sm:$0xff] %v2245_v1  ;;  %v2146_v50 = vadd.f32 %v3380_v31, %v1985_v3  ;;  %v3271_v52 = vadd.f32 %v3270_v43, %v3269_v24  ;;  %v3383_v26 = vadd.f32 %v3382_v48, %v3381_v19  ;;  %v871_v19 = vld [vmem:[#allocation2 + $0xf0] sm:$0xff]  ;;  %v3171_v31 = vadd.f32 %v4577_v46, %v4575_v41 }
 0x1e6   : > { %v3272_v37 = vpop.f32.mrf.mxu1  ;;  %v3384_v20 = vpop.f32.mrf.mxu0 }
 0x1e7   : > { %v2246_v6 = vadd.f32 %v2146_v50, %v867_v36  ;;  %v1990_v8 = vadd.f32 %v3271_v52, %v3159_v35  ;;  %v872_v52 = vld [vmem:[#allocation2 + $0x8] sm:$0xff] }
 0x1e8   : > { %v3273_v63 = vpop.f32.mrf.mxu1  ;;  %v3385_v15 = vpop.f32.mrf.mxu0 }
 0x1e9   : > { %2278 = vst [vmem:[#allocation2 + $0x88] sm:$0xff] %v2246_v6  ;;  %v2151_v56 = vadd.f32 %v3383_v26, %v1990_v8  ;;  %v3274_v61 = vadd.f32 %v3273_v63, %v3272_v37  ;;  %v3386_v25 = vadd.f32 %v3385_v15, %v3384_v20  ;;  %v3174_v6 = vadd.f32 %v4583_v58, %v4581_v53  ;;  %v874_v58 = vld [vmem:[#allocation2 + $0x38] sm:$0xff] }
 0x1ea   : > { %v3275_v55 = vpop.f32.mrf.mxu1  ;;  %v3387_v57 = vpop.f32.mrf.mxu0 }
 0x1eb   : > { %v2247_v11 = vadd.f32 %v2151_v56, %v868_v38  ;;  %v1993_v13 = vadd.f32 %v3274_v61, %v3162_v51  ;;  %v873_v51 = vld [vmem:[#allocation2 + $0x78] sm:$0xff] }
 0x1ec   : > { %v3276_v42 = vpop.f32.mrf.mxu1  ;;  %v3388_v27 = vpop.f32.mrf.mxu0 }
 0x1ed   : > { %2279 = vst [vmem:[#allocation2 + $0xe8] sm:$0xff] %v2247_v11  ;;  %v2154_v4 = vadd.f32 %v3386_v25, %v1993_v13  ;;  %v3277_v7 = vadd.f32 %v3276_v42, %v3275_v55  ;;  %v3389_v60 = vadd.f32 %v3388_v27, %v3387_v57 }
 0x1ee   : > { %v3278_v9 = vpop.f32.mrf.mxu1  ;;  %v3390_v12 = vpop.f32.mrf.mxu0 }
 0x1ef   : > { %v2248_v16 = vadd.f32 %v2154_v4, %v869_v40  ;;  %v1998_v18 = vadd.f32 %v3277_v7, %v3165_v2 }
 0x1f0   : > { %v3279_v14 = vpop.f32.mrf.mxu1  ;;  %v3391_v30 = vpop.f32.mrf.mxu0 }
 0x1f1   : > { %2280 = vst [vmem:[#allocation2 + $0xb8] sm:$0xff] %v2248_v16  ;;  %v2159_v45 = vadd.f32 %v3389_v60, %v1998_v18  ;;  %v3280_v47 = vadd.f32 %v3279_v14, %v3278_v9  ;;  %v3392_v24 = vadd.f32 %v3391_v30, %v3390_v12  ;;  %v875_v60 = vld [vmem:[#allocation2 + $0x58] sm:$0xff] }
 0x1f2   : > { %v3281_v17 = vpop.f32.mrf.mxu1  ;;  %v3393_v22 = vpop.f32.mrf.mxu0 }
 0x1f3   : > { %v2249_v21 = vadd.f32 %v2159_v45, %v870_v62  ;;  %v2001_v23 = vadd.f32 %v3280_v47, %v3168_v32 }
 0x1f4   : > { %v3282_v1 = vpop.f32.mrf.mxu1  ;;  %v3394_v3 = vpop.f32.mrf.mxu0 }
 0x1f5   : > { %2281 = vst [vmem:[#allocation2 + $0x60] sm:$0xff] %v2249_v21  ;;  %v2162_v36 = vadd.f32 %v3392_v24, %v2001_v23  ;;  %v3283_v43 = vadd.f32 %v3282_v1, %v3281_v17  ;;  %v3395_v50 = vadd.f32 %v3394_v3, %v3393_v22  ;;  %v876_v21 = vld [vmem:[#allocation2 + $0x40] sm:$0xff] }
 0x1f6   : > { %v3284_v48 = vpop.f32.mrf.mxu1  ;;  %v3396_v35 = vpop.f32.mrf.mxu0 }
 0x1f7   : > { %v2250_v28 = vadd.f32 %v2162_v36, %v871_v19  ;;  %v2006_v33 = vadd.f32 %v3283_v43, %v3171_v31 }
 0x1f8   : > { %v3285_v37 = vpop.f32.mrf.mxu1  ;;  %v3397_v20 = vpop.f32.mrf.mxu0 }
 0x1f9   : > { %2282 = vst [vmem:[#allocation2 + $0xf0] sm:$0xff] %v2250_v28  ;;  %v2167_v8 = vadd.f32 %v3395_v50, %v2006_v33  ;;  %v3286_v26 = vadd.f32 %v3285_v37, %v3284_v48  ;;  %v3398_v15 = vadd.f32 %v3397_v20, %v3396_v35  ;;  %v877_v48 = vld [vmem:[#allocation2 + $0xc8] sm:$0xff] }
 0x1fa   : > { %v3287_v38 = vpop.f32.mrf.mxu1  ;;  %v3399_v63 = vpop.f32.mrf.mxu0 }
 0x1fb   : > { %v2251_v41 = vadd.f32 %v2167_v8, %v872_v52  ;;  %v2009_v46 = vadd.f32 %v3286_v26, %v3174_v6  ;;  %v878_v8 = vld [vmem:[#allocation2 + $0xe0] sm:$0xff] }
 0x1fc   : > { %v3288_v56 = vpop.f32.mrf.mxu1  ;;  %v3400_v61 = vpop.f32.mrf.mxu0 }
 0x1fd   : > { %2283 = vst [vmem:[#allocation2 + $0x8] sm:$0xff] %v2251_v41  ;;  %v2170_v55 = vadd.f32 %v3398_v15, %v2009_v46  ;;  %v3289_v57 = vadd.f32 %v3288_v56, %v3287_v38  ;;  %v3401_v53 = vadd.f32 %v3400_v61, %v3399_v63  ;;  %v879_v61 = vld [vmem:[#allocation2 + $0x90] sm:$0xff] }
 0x1fe   : > { %v3290_v11 = vpop.f32.mrf.mxu1  ;;  %v3402_v13 = vpop.f32.mrf.mxu0 }
 0x1ff   : > { %v2252_v25 = vadd.f32 %v2170_v55, %v873_v51  ;;  %v2014_v40 = vadd.f32 %v3289_v57, %v4495_v29 }
 0x200   : > { %v3291_v42 = vpop.f32.mrf.mxu1  ;;  %v3403_v27 = vpop.f32.mrf.mxu0 }
 0x201   : > { %2284 = vst [vmem:[#allocation2 + $0x78] sm:$0xff] %v2252_v25  ;;  %v2175_v2 = vadd.f32 %v3401_v53, %v2014_v40  ;;  %v3292_v4 = vadd.f32 %v3291_v42, %v3290_v11  ;;  %v3404_v18 = vadd.f32 %v3403_v27, %v3402_v13  ;;  %v880_v42 = vld [vmem:[#allocation2 + $0x70] sm:$0xff] }
 0x202   : > { %v3293_v7 = vpop.f32.mrf.mxu1  ;;  %v3405_v9 = vpop.f32.mrf.mxu0 }
 0x203   : > { %v2253_v12 = vadd.f32 %v2175_v2, %v874_v58  ;;  %v2017_v16 = vadd.f32 %v3292_v4, %v4501_v34 }
 0x204   : > { %v3294_v62 = vpop.f32.mrf.mxu1  ;;  %v3406_v14 = vpop.f32.mrf.mxu0 }
 0x205   : > { %2285 = vst [vmem:[#allocation2 + $0x38] sm:$0xff] %v2253_v12  ;;  %v2178_v30 = vadd.f32 %v3404_v18, %v2017_v16  ;;  %v3295_v32 = vadd.f32 %v3294_v62, %v3293_v7  ;;  %v3407_v22 = vadd.f32 %v3406_v14, %v3405_v9 }
 0x206   : > { %v3296_v29 = vpop.f32.mrf.mxu1  ;;  %v3408_v45 = vpop.f32.mrf.mxu0 }
 0x207   : > { %v2254_v47 = vadd.f32 %v2178_v30, %v875_v60  ;;  %v2022_v17 = vadd.f32 %v3295_v32, %v4507_v39  ;;  %v881_v60 = vld [vmem:[#allocation2 + $0xc0] sm:$0xff] }
 0x208   : > { %v3297_v23 = vpop.f32.mrf.mxu1  ;;  %v3409_v24 = vpop.f32.mrf.mxu0 }
 0x209   : > { %2286 = vst [vmem:[#allocation2 + $0x58] sm:$0xff] %v2254_v47  ;;  %v2183_v19 = vadd.f32 %v3407_v22, %v2022_v17  ;;  %v3298_v1 = vadd.f32 %v3297_v23, %v3296_v29  ;;  %v3410_v43 = vadd.f32 %v3409_v24, %v3408_v45  ;;  %v882_v22 = vld [vmem:[#allocation2 + $0xa8] sm:$0xff] }
 0x20a   : > { %v3299_v34 = vpop.f32.mrf.mxu1  ;;  %v3411_v3 = vpop.f32.mrf.mxu0 }
 0x20b   : > { %v2255_v31 = vadd.f32 %v2183_v19, %v876_v21  ;;  %v2025_v36 = vadd.f32 %v3298_v1, %v4513_v44 }
 0x20c   : > { %v3300_v35 = vpop.f32.mrf.mxu1  ;;  %v3412_v28 = vpop.f32.mrf.mxu0 }
 0x20d   : > { %2287 = vst [vmem:[#allocation2 + $0x40] sm:$0xff] %v2255_v31  ;;  %v2186_v33 = vadd.f32 %v3410_v43, %v2025_v36  ;;  %v3301_v50 = vadd.f32 %v3300_v35, %v3299_v34  ;;  %v3413_v6 = vadd.f32 %v3412_v28, %v3411_v3  ;;  %v883_v36 = vld [vmem:[#allocation2 + $0xd0] sm:$0xff] }
 0x20e   : > { %v3302_v39 = vpop.f32.mrf.mxu1  ;;  %v3414_v52 = vpop.f32.mrf.mxu0 }
 0x20f   : > { %v2256_v37 = vadd.f32 %v2186_v33, %v877_v48  ;;  %v2030_v20 = vadd.f32 %v3301_v50, %v4519_v49 }
 0x210   : > { %v3303_v26 = vpop.f32.mrf.mxu1  ;;  %v3415_v38 = vpop.f32.mrf.mxu0 }
 0x211   : > { %2288 = vst [vmem:[#allocation2 + $0xc8] sm:$0xff] %v2256_v37  ;;  %v2191_v63 = vadd.f32 %v3413_v6, %v2030_v20  ;;  %v3304_v41 = vadd.f32 %v3303_v26, %v3302_v39  ;;  %v3416_v56 = vadd.f32 %v3415_v38, %v3414_v52  ;;  %v4960_v39 = vld [vmem:[#allocation15_spill] sm:$0xff]  ;;  %v884_v20 = vld [vmem:[#allocation2 + $0x10] sm:$0xff] }
 0x212   : > { %v3305_v44 = vpop.f32.mrf.mxu1  ;;  %v3417_v46 = vpop.f32.mrf.mxu0 }
 0x213   : > { %v2257_v15 = vadd.f32 %v2191_v63, %v878_v8  ;;  %v2033_v51 = vadd.f32 %v3304_v41, %v4525_v54 }
 0x214   : > { %v3306_v55 = vpop.f32.mrf.mxu1  ;;  %v3418_v57 = vpop.f32.mrf.mxu0 }
 0x215   : > { %2289 = vst [vmem:[#allocation2 + $0xe0] sm:$0xff] %v2257_v15  ;;  %v2194_v11 = vadd.f32 %v3416_v56, %v2033_v51  ;;  %v3307_v13 = vadd.f32 %v3306_v55, %v3305_v44  ;;  %v3419_v58 = vadd.f32 %v3418_v57, %v3417_v46  ;;  %v4961_v44 = vld [vmem:[#allocation16_spill] sm:$0xff] }
 0x216   : > { %v3308_v49 = vpop.f32.mrf.mxu1  ;;  %v3420_v25 = vpop.f32.mrf.mxu0  ;;  %v885_v51 = vld [vmem:[#allocation2 + $0x28] sm:$0xff] }
 0x217   : > { %v2258_v40 = vadd.f32 %v2194_v11, %v879_v61  ;;  %v2038_v53 = vadd.f32 %v3307_v13, %v4531_v59 }
 0x218   : > { %v3309_v27 = vpop.f32.mrf.mxu1  ;;  %v3421_v2 = vpop.f32.mrf.mxu0 }
 0x219   : > { %2290 = vst [vmem:[#allocation2 + $0x90] sm:$0xff] %v2258_v40  ;;  %v2199_v4 = vadd.f32 %v3419_v58, %v2038_v53  ;;  %v3310_v7 = vadd.f32 %v3309_v27, %v3308_v49  ;;  %v3422_v18 = vadd.f32 %v3421_v2, %v3420_v25  ;;  %v4962_v25 = vld [vmem:[#allocation17_spill] sm:$0xff]  ;;  %v886_v58 = vld [vmem:[#allocation2 + $0xa0] sm:$0xff] }
 0x21a   : > { %v3311_v54 = vpop.f32.mrf.mxu1  ;;  %v3423_v9 = vpop.f32.mrf.mxu0 }
 0x21b   : > { %v2259_v12 = vadd.f32 %v2199_v4, %v880_v42  ;;  %v2041_v16 = vadd.f32 %v3310_v7, %v4537_v0 }
 0x21c   : > { %v3312_v62 = vpop.f32.mrf.mxu1  ;;  %v3424_v14 = vpop.f32.mrf.mxu0 }
 0x21d   : > { %2291 = vst [vmem:[#allocation2 + $0x70] sm:$0xff] %v2259_v12  ;;  %v2202_v30 = vadd.f32 %v3422_v18, %v2041_v16  ;;  %v3313_v32 = vadd.f32 %v3312_v62, %v3311_v54  ;;  %v3425_v17 = vadd.f32 %v3424_v14, %v3423_v9  ;;  %v4963_v12 = vld [vmem:[#allocation18_spill] sm:$0xff] }
 0x21e   : > { %v3314_v59 = vpop.f32.mrf.mxu1  ;;  %v3426_v29 = vpop.f32.mrf.mxu0 }
 0x21f   : > { %v2260_v45 = vadd.f32 %v2202_v30, %v881_v60  ;;  %v2046_v47 = vadd.f32 %v3313_v32, %v4543_v5  ;;  %v887_v60 = vld [vmem:[#allocation2 + $0xf8] sm:$0xff] }
 0x220   : > { %v3315_v21 = vpop.f32.mrf.mxu1  ;;  %v3427_v23 = vpop.f32.mrf.mxu0 }
 0x221   : > { %2292 = vst [vmem:[#allocation2 + $0xc0] sm:$0xff] %v2260_v45  ;;  %v2207_v24 = vadd.f32 %v3425_v17, %v2046_v47  ;;  %v3316_v19 = vadd.f32 %v3315_v21, %v3314_v59  ;;  %v3428_v31 = vadd.f32 %v3427_v23, %v3426_v29  ;;  %v4964_v47 = vld [vmem:[#allocation19_spill] sm:$0xff] }
 0x222   : > { %v3317_v0 = vpop.f32.mrf.mxu1  ;;  %v3429_v1 = vpop.f32.mrf.mxu0  ;;  %v888_v21 = vld [vmem:[#allocation2 + $0x20] sm:$0xff] }
 0x223   : > { %v2261_v34 = vadd.f32 %v2207_v24, %v882_v22  ;;  %v2049_v3 = vadd.f32 %v3316_v19, %v4549_v10 }
 0x224   : > { %v3318_v43 = vpop.f32.mrf.mxu1  ;;  %v3430_v48 = vpop.f32.mrf.mxu0 }
 0x225   : > { %2293 = vst [vmem:[#allocation2 + $0xa8] sm:$0xff] %v2261_v34  ;;  %v2210_v35 = vadd.f32 %v3428_v31, %v2049_v3  ;;  %v3319_v28 = vadd.f32 %v3318_v43, %v3317_v0  ;;  %v3431_v37 = vadd.f32 %v3430_v48, %v3429_v1  ;;  %v4965_v34 = vld [vmem:[#allocation20_spill] sm:$0xff] }
 0x226   : > { %v3320_v5 = vpop.f32.mrf.mxu1  ;;  %v3432_v33 = vpop.f32.mrf.mxu0 }
 0x227   : > { %v2262_v50 = vadd.f32 %v2210_v35, %v883_v36  ;;  %v2054_v52 = vadd.f32 %v3319_v28, %v4960_v39  ;;  %v889_v36 = vld [vmem:[#allocation2 + $0x98] sm:$0xff] }
 0x228   : > { %v3321_v6 = vpop.f32.mrf.mxu1  ;;  %v3433_v8 = vpop.f32.mrf.mxu0 }
 0x229   : > { %2294 = vst [vmem:[#allocation2 + $0xd0] sm:$0xff] %v2262_v50  ;;  %v2215_v26 = vadd.f32 %v3431_v37, %v2054_v52  ;;  %v3322_v38 = vadd.f32 %v3321_v6, %v3320_v5  ;;  %v3434_v15 = vadd.f32 %v3433_v8, %v3432_v33 }
 0x22a   : > { %v3323_v10 = vpop.f32.mrf.mxu1  ;;  %v3435_v63 = vpop.f32.mrf.mxu0 }
 0x22b   : > { %v2263_v41 = vadd.f32 %v2215_v26, %v884_v20  ;;  %v2057_v46 = vadd.f32 %v3322_v38, %v4961_v44 }
 0x22c   : > { %v3324_v56 = vpop.f32.mrf.mxu1  ;;  %v3436_v61 = vpop.f32.mrf.mxu0 }
 0x22d   : > { %2295 = vst [vmem:[#allocation2 + $0x10] sm:$0xff] %v2263_v41  ;;  %v2218_v55 = vadd.f32 %v3434_v15, %v2057_v46  ;;  %v3325_v57 = vadd.f32 %v3324_v56, %v3323_v10  ;;  %v3437_v53 = vadd.f32 %v3436_v61, %v3435_v63 }
 0x22e   : > { %v3326_v11 = vpop.f32.mrf.mxu1  ;;  %v3438_v13 = vpop.f32.mrf.mxu0 }
 0x22f   : > { %v2264_v49 = vadd.f32 %v2218_v55, %v885_v51  ;;  %v2062_v40 = vadd.f32 %v3325_v57, %v4962_v25 }
 0x230   : > { %v3327_v42 = vpop.f32.mrf.mxu1  ;;  %v3439_v27 = vpop.f32.mrf.mxu0 }
 0x231   : > { %2296 = vst [vmem:[#allocation2 + $0x28] sm:$0xff] %v2264_v49  ;;  %v2223_v2 = vadd.f32 %v3437_v53, %v2062_v40  ;;  %v3328_v4 = vadd.f32 %v3327_v42, %v3326_v11  ;;  %v3440_v18 = vadd.f32 %v3439_v27, %v3438_v13 }
 0x232   : > { %v3329_v7 = vpop.f32.mrf.mxu1  ;;  %v3441_v54 = vpop.f32.mrf.mxu0 }
 0x233   : > { %v2265_v9 = vadd.f32 %v2223_v2, %v886_v58  ;;  %v2065_v16 = vadd.f32 %v3328_v4, %v4963_v12 }
 0x234   : > { %v3330_v62 = vpop.f32.mrf.mxu1  ;;  %v3442_v14 = vpop.f32.mrf.mxu0 }
 0x235   : > { %2297 = vst [vmem:[#allocation2 + $0xa0] sm:$0xff] %v2265_v9  ;;  %v2226_v30 = vadd.f32 %v3440_v18, %v2065_v16  ;;  %v3331_v32 = vadd.f32 %v3330_v62, %v3329_v7  ;;  %v3443_v22 = vadd.f32 %v3442_v14, %v3441_v54 }
 0x236   : > { %v3332_v59 = vpop.f32.mrf.mxu1  ;;  %v3444_v29 = vpop.f32.mrf.mxu0 }
 0x237   : > { %v2266_v45 = vadd.f32 %v2226_v30, %v887_v60  ;;  %v2070_v17 = vadd.f32 %v3331_v32, %v4964_v47 }
 0x238   : > { %v3333_v23 = vpop.f32.mrf.mxu1  ;;  %v3445_v24 = vpop.f32.mrf.mxu0 }
 0x239   : > { %2298 = vst [vmem:[#allocation2 + $0xf8] sm:$0xff] %v2266_v45  ;;  %v2231_v19 = vadd.f32 %v3443_v22, %v2070_v17  ;;  %v3334_v0 = vadd.f32 %v3333_v23, %v3332_v59  ;;  %v3446_v31 = vadd.f32 %v3445_v24, %v3444_v29 }
 0x23b   : > { %v2267_v1 = vadd.f32 %v2231_v19, %v888_v21  ;;  %v2073_v3 = vadd.f32 %v3334_v0, %v4965_v34 }
 0x23d   : > { %2299 = vst [vmem:[#allocation2 + $0x20] sm:$0xff] %v2267_v1  ;;  %v2234_v43 = vadd.f32 %v3446_v31, %v2073_v3  ;;  %2304 = sbr.rel (%p3019_p3) target bundleno = 663 (0x297), region = 108 }
 0x23f   : > { %v2268_v48 = vadd.f32 %v2234_v43, %v889_v36 }
 0x241   : > { %2300 = vst [vmem:[#allocation2 + $0x98] sm:$0xff] %v2268_v48 }
 0x242   : > { %v4636_v35 = vld [vmem:[#allocation2 + $0xb0] sm:$0xff]  ;;  %v4638_v28 = vld [vmem:[#allocation2] sm:$0xff]  ;;  %v4640_v5 = vld [vmem:[#allocation2 + $0xd8] sm:$0xff] }
 0x243   : > { %2337 = vst [vmem:[%s4335_s0] sm:$0xff] %v4636_v35  ;;  %2338 = vst [vmem:[%s4335_s0 + $0x8] sm:$0xff] %v4638_v28  ;;  %v4648_v33 = vld [vmem:[#allocation2 + $0x18] sm:$0xff]  ;;  %v4650_v50 = vld [vmem:[#allocation2 + $0x50] sm:$0xff] }
 0x244   : > { %2339 = vst [vmem:[%s4335_s0 + $0x10] sm:$0xff] %v4640_v5  ;;  %v4652_v39 = vld [vmem:[#allocation2 + $0x68] sm:$0xff]  ;;  %2340 = vst [vmem:[%s4335_s0 + $0x18] sm:$0xff] %v4648_v33  ;;  %v4660_v52 = vld [vmem:[#allocation2 + $0x30] sm:$0xff] }
 0x245   : > { %2341 = vst [vmem:[%s4335_s0 + $0x20] sm:$0xff] %v4650_v50  ;;  %2342 = vst [vmem:[%s4335_s0 + $0x28] sm:$0xff] %v4652_v39  ;;  %v4662_v37 = vld [vmem:[#allocation2 + $0x48] sm:$0xff]  ;;  %v4664_v20 = vld [vmem:[#allocation2 + $0x80] sm:$0xff] }
 0x246   : > { %2343 = vst [vmem:[%s4335_s0 + $0x30] sm:$0xff] %v4660_v52  ;;  %2344 = vst [vmem:[%s4335_s0 + $0x38] sm:$0xff] %v4662_v37  ;;  %v2369_v6 = vmax.f32 %v4636_v35, %v4664_v20  ;;  %v4674_v8 = vld [vmem:[#allocation2 + $0x88] sm:$0xff]  ;;  %v4678_v38 = vld [vmem:[#allocation2 + $0xb8] sm:$0xff] }
 0x247   : > { %2345 = vst [vmem:[%s4335_s0 + $0x40] sm:$0xff] %v4664_v20  ;;  %v4676_v26 = vld [vmem:[#allocation2 + $0xe8] sm:$0xff]  ;;  %2346 = vst [vmem:[%s4335_s0 + $0x48] sm:$0xff] %v4674_v8  ;;  %v2372_v10 = vmax.f32 %v4638_v28, %v4674_v8  ;;  %v2378_v41 = vmax.f32 %v4648_v33, %v4678_v38  ;;  %v4692_v44 = vld [vmem:[#allocation2 + $0x60] sm:$0xff] }
 0x248   : > { %2347 = vst [vmem:[%s4335_s0 + $0x50] sm:$0xff] %v4676_v26  ;;  %v2375_v63 = vmax.f32 %v4640_v5, %v4676_v26  ;;  %2348 = vst [vmem:[%s4335_s0 + $0x58] sm:$0xff] %v4678_v38  ;;  %v4694_v46 = vld [vmem:[#allocation2 + $0xf0] sm:$0xff]  ;;  %v4696_v15 = vld [vmem:[#allocation2 + $0x8] sm:$0xff]  ;;  %v2381_v55 = vmax.f32 %v4650_v50, %v4692_v44 }
 0x249   : > { %2349 = vst [vmem:[%s4335_s0 + $0x60] sm:$0xff] %v4692_v44  ;;  %2350 = vst [vmem:[%s4335_s0 + $0x68] sm:$0xff] %v4694_v46  ;;  %v4704_v51 = vld [vmem:[#allocation2 + $0x78] sm:$0xff]  ;;  %v2384_v57 = vmax.f32 %v4652_v39, %v4694_v46  ;;  %v4718_v49 = vld [vmem:[#allocation2 + $0x40] sm:$0xff]  ;;  %v2387_v2 = vmax.f32 %v4660_v52, %v4696_v15 }
 0x24a   : > { %2351 = vst [vmem:[%s4335_s0 + $0x70] sm:$0xff] %v4696_v15  ;;  %v2321_v56 = vld [vmem:[#allocation2 + $0x38] sm:$0xff]  ;;  %2352 = vst [vmem:[%s4335_s0 + $0x78] sm:$0xff] %v4704_v51  ;;  %v4720_v25 = vld [vmem:[#allocation2 + $0xc8] sm:$0xff]  ;;  %v2376_v53 = vmax.f32 %v2375_v63, %v4718_v49  ;;  %v2390_v14 = vmax.f32 %v4662_v37, %v4704_v51 }
 0x24b   : > { %v4706_v61 = vld [vmem:[#allocation2 + $0x58] sm:$0xff]  ;;  %2353 = vst [vmem:[%s4335_s0 + $0x80] sm:$0xff] %v2321_v56  ;;  %v2370_v11 = vmax.f32 %v2369_v6, %v2321_v56  ;;  %v4722_v40 = vld [vmem:[#allocation2 + $0xe0] sm:$0xff]  ;;  %2355 = vst [vmem:[%s4335_s0 + $0x90] sm:$0xff] %v4718_v49  ;;  %v2379_v4 = vmax.f32 %v2378_v41, %v4720_v25 }
 0x24c   : > { %2354 = vst [vmem:[%s4335_s0 + $0x88] sm:$0xff] %v4706_v61  ;;  %v2373_v13 = vmax.f32 %v2372_v10, %v4706_v61  ;;  %2356 = vst [vmem:[%s4335_s0 + $0x98] sm:$0xff] %v4720_v25  ;;  %v4731_v58 = vld [vmem:[#allocation2 + $0x90] sm:$0xff]  ;;  %v4735_v27 = vld [vmem:[#allocation2 + $0xc0] sm:$0xff]  ;;  %v2382_v30 = vmax.f32 %v2381_v55, %v4722_v40 }
 0x24d   : > { %2357 = vst [vmem:[%s4335_s0 + $0xa0] sm:$0xff] %v4722_v40  ;;  %v4733_v42 = vld [vmem:[#allocation2 + $0x70] sm:$0xff]  ;;  %2358 = vst [vmem:[%s4335_s0 + $0xa8] sm:$0xff] %v4731_v58  ;;  %v2329_v7 = vld [vmem:[#allocation2 + $0xa8] sm:$0xff]  ;;  %v2385_v32 = vmax.f32 %v2384_v57, %v4731_v58  ;;  %v2391_v36 = vmax.f32 %v2390_v14, %v4735_v27 }
 0x24e   : > { %2359 = vst [vmem:[%s4335_s0 + $0xb0] sm:$0xff] %v4733_v42  ;;  %2360 = vst [vmem:[%s4335_s0 + $0xb8] sm:$0xff] %v4735_v27  ;;  %v2330_v54 = vld [vmem:[#allocation2 + $0xd0] sm:$0xff]  ;;  %v2371_v12 = vmax.f32 %v2370_v11, %v2329_v7  ;;  %v4749_v18 = vld [vmem:[#allocation2 + $0x28] sm:$0xff]  ;;  %v2388_v23 = vmax.f32 %v2387_v2, %v4733_v42 }
 0x24f   : > { %v2331_v9 = vld [vmem:[#allocation2 + $0x10] sm:$0xff]  ;;  %2361 = vst [vmem:[%s4335_s0 + $0xc0] sm:$0xff] %v2329_v7  ;;  %2362 = vst [vmem:[%s4335_s0 + $0xc8] sm:$0xff] %v2330_v54  ;;  %v2374_v16 = vmax.f32 %v2373_v13, %v2330_v54  ;;  %v4751_v60 = vld [vmem:[#allocation2 + $0xa0] sm:$0xff]  ;;  %v2380_v0 = vmax.f32 %v2379_v4, %v4749_v18 }
 0x250   : > { %2363 = vst [vmem:[%s4335_s0 + $0xd0] sm:$0xff] %v2331_v9  ;;  %v4753_v62 = vld [vmem:[#allocation2 + $0xf8] sm:$0xff]  ;;  %v2377_v59 = vmax.f32 %v2376_v53, %v2331_v9  ;;  %2364 = vst [vmem:[%s4335_s0 + $0xd8] sm:$0xff] %v4749_v18  ;;  %v4765_v29 = vld [vmem:[#allocation2 + $0x20] sm:$0xff]  ;;  %v2393_v47 = vsub.f32 %v4636_v35, %v2371_v12  ;;  %v2401_v17 = vsub.f32 %v4664_v20, %v2371_v12 }
 0x251   : > { %2365 = vst [vmem:[%s4335_s0 + $0xe0] sm:$0xff] %v4751_v60  ;;  %2366 = vst [vmem:[%s4335_s0 + $0xe8] sm:$0xff] %v4753_v62  ;;  %v4767_v45 = vld [vmem:[#allocation2 + $0x98] sm:$0xff]  ;;  %v2409_v22 = vsub.f32 %v2321_v56, %v2371_v12  ;;  %v2417_v21 = vsub.f32 %v2329_v7, %v2371_v12  ;;  %v2394_v24 = vsub.f32 %v4638_v28, %v2374_v16 }
 0x252   : > { %2367 = vst [vmem:[%s4335_s0 + $0xf0] sm:$0xff] %v4765_v29  ;;  %2368 = vst [vmem:[%s4335_s0 + $0xf8] sm:$0xff] %v4767_v45  ;;  %v2402_v19 = vsub.f32 %v4674_v8, %v2374_v16  ;;  %v2425_v1 = vmul.f32 1.442695, %v2393_v47  ;;  %v2441_v34 = vmul.f32 1.442695, %v2401_v17  ;;  %v2410_v31 = vsub.f32 %v4706_v61, %v2374_v16 }
 0x253   : > { %v2457_v3 = vmul.f32 1.442695, %v2409_v22  ;;  %v2473_v43 = vmul.f32 1.442695, %v2417_v21  ;;  %v2418_v48 = vsub.f32 %v2330_v54, %v2374_v16  ;;  %v2395_v35 = vsub.f32 %v4640_v5, %v2377_v59  ;;  %v4804_v47 = vld [vmem:[%s4333_s30 + $0x20] sm:$0xff]  }
 0x254   : > { %3749 = vpow2.f32 %v2425_v1  ;;  %v2427_v20 = vmul.f32 1.442695, %v2394_v24  ;;  %v2383_v6 = vmax.f32 %v2382_v30, %v4751_v60  ;;  %v2386_v28 = vmax.f32 %v2385_v32, %v4753_v62 }
 0x255   : > { %3751 = vpow2.f32 %v2441_v34  ;;  %v2443_v8 = vmul.f32 1.442695, %v2402_v19  ;;  %v2403_v10 = vsub.f32 %v4676_v26, %v2377_v59  ;;  %v2411_v63 = vsub.f32 %v4718_v49, %v2377_v59  ;;  %v4813_v34 = vld [vmem:[%s4333_s30 + $0x40] sm:$0xff]  }
 0x256   : > { %3753 = vpow2.f32 %v2457_v3  ;;  %v2459_v41 = vmul.f32 1.442695, %v2410_v31  ;;  %v2419_v56 = vsub.f32 %v2331_v9, %v2377_v59  ;;  %v2396_v61 = vsub.f32 %v4648_v33, %v2380_v0  ;;  %v4801_v59 = vld [vmem:[%s4333_s30] sm:$0xff]  }
 0x257   : > { %3755 = vpow2.f32 %v2473_v43  ;;  %v2475_v55 = vmul.f32 1.442695, %v2418_v48  ;;  %v2429_v5 = vmul.f32 1.442695, %v2395_v35  ;;  %v2404_v57 = vsub.f32 %v4678_v38, %v2380_v0  ;;  %v4818_v48 = vld [vmem:[%s4333_s30 + $0x60] sm:$0xff]  }
 0x258   : > { %3757 = vpow2.f32 %v2427_v20  ;;  %v2412_v11 = vsub.f32 %v4720_v25, %v2380_v0  ;;  %v2420_v13 = vsub.f32 %v4749_v18, %v2380_v0  ;;  %v2397_v53 = vsub.f32 %v4650_v50, %v2383_v6 }
 0x259   : > { %3759 = vpow2.f32 %v2443_v8  ;;  %v2445_v26 = vmul.f32 1.442695, %v2403_v10  ;;  %v2461_v49 = vmul.f32 1.442695, %v2411_v63  ;;  %v2405_v2 = vsub.f32 %v4692_v44, %v2383_v6 }
 0x25a   : > { %3761 = vpow2.f32 %v2459_v41  ;;  %v2477_v4 = vmul.f32 1.442695, %v2419_v56  ;;  %v2431_v33 = vmul.f32 1.442695, %v2396_v61  ;;  %v2413_v7 = vsub.f32 %v4722_v40, %v2383_v6 }
 0x25b   : > { %3763 = vpow2.f32 %v2475_v55  ;;  %v2447_v54 = vmul.f32 1.442695, %v2404_v57  ;;  %v2421_v38 = vsub.f32 %v4751_v60, %v2383_v6  ;;  %v2398_v25 = vsub.f32 %v4652_v39, %v2386_v28 }
 0x25c   : > { %3765 = vpow2.f32 %v2429_v5  ;;  %v2463_v9 = vmul.f32 1.442695, %v2412_v11  ;;  %v2479_v50 = vmul.f32 1.442695, %v2420_v13  ;;  %v2433_v12 = vmul.f32 1.442695, %v2397_v53 }
 0x25d   : > { %3767 = vpow2.f32 %v2445_v26  ;;  %v2449_v16 = vmul.f32 1.442695, %v2405_v2  ;;  %v2406_v44 = vsub.f32 %v4694_v46, %v2386_v28  ;;  %v2414_v18 = vsub.f32 %v4731_v58, %v2386_v28 }
 0x25e   : > { %3769 = vpow2.f32 %v2461_v49  ;;  %v2465_v40 = vmul.f32 1.442695, %v2413_v7  ;;  %v2422_v14 = vsub.f32 %v4753_v62, %v2386_v28  ;;  %v2389_v60 = vmax.f32 %v2388_v23, %v4765_v29 }
 0x25f   : > { %3771 = vpow2.f32 %v2477_v4  ;;  %v2481_v39 = vmul.f32 1.442695, %v2421_v38  ;;  %v2435_v30 = vmul.f32 1.442695, %v2398_v25  ;;  %v2392_v32 = vmax.f32 %v2391_v36, %v4767_v45 }
 0x260   : > { %3773 = vpow2.f32 %v2431_v33  ;;  %v2399_v46 = vsub.f32 %v4660_v52, %v2389_v60  ;;  %v2407_v58 = vsub.f32 %v4696_v15, %v2389_v60  ;;  %v2415_v17 = vsub.f32 %v4733_v42, %v2389_v60  ;;  %v3096_v33 = vld [vmem:[%s4333_s30 + $0x8] sm:$0xff]  }
 0x261   : > { %v3750_v62 = vpop.eup %3749  ;;  %3775 = vpow2.f32 %v2447_v54  ;;  %v2451_v22 = vmul.f32 1.442695, %v2406_v44  ;;  %v2467_v21 = vmul.f32 1.442695, %v2414_v18  ;;  %v2423_v23 = vsub.f32 %v4765_v29, %v2389_v60 }
 0x262   : > { %v3752_v24 = vpop.eup %3751  ;;  %3777 = vpow2.f32 %v2463_v9  ;;  %v2483_v19 = vmul.f32 1.442695, %v2422_v14  ;;  %v3034_v0 = vunpack.c.l.bf16 %v4801_v59  ;;  %v3050_v1 = vunpack.c.l.bf16 %v4804_v47  ;;  %v3100_v9 = vld [vmem:[%s4333_s30 + $0x28] sm:$0xff]  }
 0x263   : > { %v3754_v52 = vpop.eup %3753  ;;  %3779 = vpow2.f32 %v2479_v50  ;;  %v2437_v15 = vmul.f32 1.442695, %v2399_v46  ;;  %v2400_v42 = vsub.f32 %v4662_v37, %v2392_v32  ;;  %v2408_v3 = vsub.f32 %v4704_v51, %v2392_v32  ;;  %v3104_v50 = vld [vmem:[%s4333_s30 + $0x48] sm:$0xff]  }
 0x264   : > { %v3756_v31 = vpop.eup %3755  ;;  %3781 = vpow2.f32 %v2433_v12  ;;  %v2453_v29 = vmul.f32 1.442695, %v2407_v58  ;;  %v2469_v36 = vmul.f32 1.442695, %v2415_v17  ;;  %v2489_v43 = vadd.f32 %v3752_v24, %v3750_v62 }
 0x265   : > { %v3758_v35 = vpop.eup %3757  ;;  %3783 = vpow2.f32 %v2449_v16  ;;  %v2485_v20 = vmul.f32 1.442695, %v2423_v23  ;;  %v2416_v6 = vsub.f32 %v4735_v27, %v2392_v32  ;;  %v3066_v28 = vunpack.c.l.bf16 %v4813_v34 }
 0x266   : > { %v3760_v8 = vpop.eup %3759  ;;  %3785 = vpow2.f32 %v2465_v40  ;;  %v2424_v37 = vsub.f32 %v4767_v45, %v2392_v32  ;;  %v2490_v10 = vadd.f32 %v3754_v52, %v2489_v43  ;;  %v2577_v51 = vmul.f32 %v3750_v62, %v3034_v0 }
 0x267   : > { %v3762_v63 = vpop.eup %3761  ;;  %3787 = vpow2.f32 %v2481_v39  ;;  %v3082_v41 = vunpack.c.l.bf16 %v4818_v48  ;;  %v2585_v56 = vmul.f32 %v3752_v24, %v3050_v1  ;;  %v2492_v61 = vadd.f32 %v3760_v8, %v3758_v35 }
 0x268   : > { %v3764_v55 = vpop.eup %3763  ;;  %3789 = vpow2.f32 %v2435_v30  ;;  %v2439_v5 = vmul.f32 1.442695, %v2400_v42  ;;  %v2455_v57 = vmul.f32 1.442695, %v2408_v3  ;;  %v3035_v27 = vunpack.c.h.bf16 %v4801_v59  ;;  %v4834_v30 = vld [vmem:[%s4333_s30 + $0x68] sm:$0xff]  }
 0x269   : > { %v3766_v11 = vpop.eup %3765  ;;  %3791 = vpow2.f32 %v2451_v22  ;;  %v2593_v45 = vmul.f32 %v3754_v52, %v3066_v28  ;;  %v2609_v13 = vadd.f32 %v2585_v56, %v2577_v51  ;;  %v3051_v53 = vunpack.c.h.bf16 %v4804_v47 }
 0x26a   : > { %v3768_v26 = vpop.eup %3767  ;;  %3793 = vpow2.f32 %v2467_v21  ;;  %v2471_v49 = vmul.f32 1.442695, %v2416_v6  ;;  %v2487_v2 = vmul.f32 1.442695, %v2424_v37  ;;  %v2491_v4 = vadd.f32 %v3756_v31, %v2490_v10  ;;  %v3101_v37 = vld [vmem:[%s4333_s30 + $0x30] sm:$0xff]  }
 0x26b   : > { %v3770_v7 = vpop.eup %3769  ;;  %3795 = vpow2.f32 %v2483_v19  ;;  %v4827_v54 = vmul.f32 %v3756_v31, %v3082_v41  ;;  %v2493_v38 = vadd.f32 %v3762_v63, %v2492_v61  ;;  %v3067_v25 = vunpack.c.h.bf16 %v4813_v34 }
 0x26c   : > { %v3772_v12 = vpop.eup %3771  ;;  %3797 = vpow2.f32 %v2437_v15  ;;  %v2578_v16 = vmul.f32 %v3758_v35, %v3035_v27  ;;  %v2586_v44 = vmul.f32 %v3760_v8, %v3051_v53  ;;  %v2495_v18 = vadd.f32 %v3768_v26, %v3766_v11  ;;  %v3097_v8 = vld [vmem:[%s4333_s30 + $0x10] sm:$0xff]  }
 0x26d   : > { %v3774_v40 = vpop.eup %3773  ;;  %3799 = vpow2.f32 %v2453_v29  ;;  %v2610_v14 = vadd.f32 %v2609_v13, %v2593_v45  ;;  %v3083_v60 = vunpack.c.h.bf16 %v4818_v48  ;;  %v3038_v39 = vunpack.c.l.bf16 %v3096_v33 }
 0x26e   : > { %v3776_v32 = vpop.eup %3775  ;;  %3801 = vpow2.f32 %v2469_v36  ;;  %v2496_v59 = vadd.f32 %v3770_v7, %v2495_v18  ;;  %v3054_v47 = vunpack.c.l.bf16 %v3100_v9  ;;  %v3070_v46 = vunpack.c.l.bf16 %v3104_v50 }
 0x26f   : > { %v3778_v58 = vpop.eup %3777  ;;  %3803 = vpow2.f32 %v2485_v20  ;;  %v2494_v17 = vadd.f32 %v3764_v55, %v2493_v38  ;;  %v2594_v62 = vmul.f32 %v3762_v63, %v3067_v25  ;;  %v2579_v22 = vmul.f32 %v3766_v11, %v3038_v39 }
 0x270   : > { %v3780_v21 = vpop.eup %3779  ;;  %3805 = vpow2.f32 %v2439_v5  ;;  %v2612_v23 = vadd.f32 %v2586_v44, %v2578_v16  ;;  %v3086_v24 = vunpack.c.l.bf16 %v4834_v30  ;;  %v2587_v19 = vmul.f32 %v3768_v26, %v3054_v47 }
 0x271   : > { %v3782_v0 = vpop.eup %3781  ;;  %3807 = vpow2.f32 %v2455_v57  ;;  %v2497_v1 = vadd.f32 %v3772_v12, %v2496_v59  ;;  %v2595_v34 = vmul.f32 %v3770_v7, %v3070_v46  ;;  %v2498_v52 = vadd.f32 %v3776_v32, %v3774_v40  ;;  %v3105_v57 = vld [vmem:[%s4333_s30 + $0x50] sm:$0xff]   ;;  %v3102_v59 = vld [vmem:[%s4333_s30 + $0x38] sm:$0xff]  }
 0x272   : > { %v3784_v15 = vpop.eup %3783  ;;  %3809 = vpow2.f32 %v2471_v49  ;;  %v2615_v42 = vadd.f32 %v2587_v19, %v2579_v22  ;;  %v3039_v3 = vunpack.c.h.bf16 %v3096_v33  ;;  %v3055_v31 = vunpack.c.h.bf16 %v3100_v9 }
 0x273   : > { %v3786_v29 = vpop.eup %3785  ;;  %3811 = vpow2.f32 %v2487_v2  ;;  %v2602_v36 = vmul.f32 %v3764_v55, %v3083_v60  ;;  %v2499_v43 = vadd.f32 %v3778_v58, %v2498_v52  ;;  %v3071_v48 = vunpack.c.h.bf16 %v3104_v50 }
 0x274   : > { %v4837_v35 = vpop.eup %3787  ;;  %3813 = vrcp.f32 %v2491_v4  ;;  %v2613_v20 = vadd.f32 %v2612_v23, %v2594_v62  ;;  %v2580_v6 = vmul.f32 %v3774_v40, %v3039_v3  ;;  %v2588_v28 = vmul.f32 %v3776_v32, %v3055_v31  ;;  %v3109_v4 = vld [vmem:[%s4333_s30 + $0x70] sm:$0xff]   ;;  %v3098_v32 = vld [vmem:[%s4333_s30 + $0x18] sm:$0xff]  }
 0x275   : > { %v3790_v10 = vpop.eup %3789  ;;  %3815 = vrcp.f32 %v2494_v17  ;;  %v2603_v51 = vmul.f32 %v3772_v12, %v3086_v24  ;;  %v2500_v63 = vadd.f32 %v3780_v21, %v2499_v43  ;;  %v3087_v41 = vunpack.c.h.bf16 %v4834_v30  ;;  %v3106_v62 = vld [vmem:[%s4333_s30 + $0x58] sm:$0xff]  }
 0x276   : > { %v3792_v56 = vpop.eup %3791  ;;  %v2616_v61 = vadd.f32 %v2615_v42, %v2595_v34  ;;  %3817 = vrcp.f32 %v2497_v1  ;;  %v2596_v55 = vmul.f32 %v3778_v58, %v3071_v48  ;;  %v2501_v5 = vadd.f32 %v3784_v15, %v3782_v0  ;;  %v3110_v43 = vld [vmem:[%s4333_s30 + $0x78] sm:$0xff]  }
 0x277   : > { %v3794_v27 = vpop.eup %3793  ;;  %v2618_v11 = vadd.f32 %v2588_v28, %v2580_v6  ;;  %3819 = vrcp.f32 %v2500_v63  ;;  %v3042_v45 = vunpack.c.l.bf16 %v3097_v8  ;;  %v3058_v13 = vunpack.c.l.bf16 %v3101_v37 }
 0x278   : > { %v3796_v53 = vpop.eup %3795  ;;  %v2611_v26 = vadd.f32 %v2610_v14, %v4827_v54  ;;  %v2614_v49 = vadd.f32 %v2613_v20, %v2602_v36  ;;  %v2502_v2 = vadd.f32 %v3786_v29, %v2501_v5  ;;  %v2504_v33 = vadd.f32 %v3792_v56, %v3790_v10 }
 0x279   : > { %v3798_v7 = vpop.eup %3797  ;;  %v3074_v38 = vunpack.c.l.bf16 %v3105_v57  ;;  %v2581_v25 = vmul.f32 %v3782_v0, %v3042_v45  ;;  %v2589_v9 = vmul.f32 %v3784_v15, %v3058_v13  ;;  %v3043_v50 = vunpack.c.h.bf16 %v3097_v8 }
 0x27a   : > { %v3800_v12 = vpop.eup %3799  ;;  %v2617_v16 = vadd.f32 %v2616_v61, %v2603_v51  ;;  %v2604_v44 = vmul.f32 %v3780_v21, %v3087_v41  ;;  %v2503_v18 = vadd.f32 %v4837_v35, %v2502_v2  ;;  %v2505_v40 = vadd.f32 %v3794_v27, %v2504_v33 }
 0x27b   : > { %v3802_v60 = vpop.eup %3801  ;;  %v2619_v54 = vadd.f32 %v2618_v11, %v2596_v55  ;;  %v3090_v14 = vunpack.c.l.bf16 %v3109_v4  ;;  %v3059_v39 = vunpack.c.h.bf16 %v3101_v37  ;;  %v3075_v30 = vunpack.c.h.bf16 %v3105_v57 }
 0x27c   : > { %v3804_v47 = vpop.eup %3803  ;;  %3821 = vrcp.f32 %v2503_v18  ;;  %v2506_v46 = vadd.f32 %v3796_v53, %v2505_v40  ;;  %v2582_v58 = vmul.f32 %v3790_v10, %v3043_v50  ;;  %v2507_v17 = vadd.f32 %v3800_v12, %v3798_v7 }
 0x27d   : > { %v3806_v22 = vpop.eup %3805  ;;  %v2597_v23 = vmul.f32 %v3786_v29, %v3074_v38  ;;  %v2621_v21 = vadd.f32 %v2589_v9, %v2581_v25  ;;  %v3091_v24 = vunpack.c.h.bf16 %v3109_v4  ;;  %v2590_v19 = vmul.f32 %v3792_v56, %v3059_v39 }
 0x27e   : > { %v3808_v0 = vpop.eup %3807  ;;  %3823 = vrcp.f32 %v2506_v46  ;;  %v2508_v1 = vadd.f32 %v3802_v60, %v2507_v17  ;;  %v3046_v34 = vunpack.c.l.bf16 %v3098_v32  ;;  %v3062_v52 = vunpack.c.l.bf16 %v3102_v59 }
 0x27f   : > { %v3810_v15 = vpop.eup %3809  ;;  %v2620_v42 = vadd.f32 %v2619_v54, %v2604_v44  ;;  %v2598_v3 = vmul.f32 %v3794_v27, %v3075_v30  ;;  %v2624_v31 = vadd.f32 %v2590_v19, %v2582_v58  ;;  %v3078_v36 = vunpack.c.l.bf16 %v3106_v62 }
 0x280   : > { %v3812_v48 = vpop.eup %3811  ;;  %v2509_v20 = vadd.f32 %v3804_v47, %v2508_v1  ;;  %v2583_v6 = vmul.f32 %v3798_v7, %v3046_v34  ;;  %v2591_v28 = vmul.f32 %v3800_v12, %v3062_v52  ;;  %v2510_v8 = vadd.f32 %v3808_v0, %v3806_v22 }
 0x281   : > { %v3814_v29 = vpop.eup %3813  ;;  %v2605_v37 = vmul.f32 %v4837_v35, %v3090_v14  ;;  %v2622_v10 = vadd.f32 %v2621_v21, %v2597_v23  ;;  %v2606_v51 = vmul.f32 %v3796_v53, %v3091_v24  ;;  %v3047_v63 = vunpack.c.h.bf16 %v3098_v32 }
 0x282   : > { %v3816_v41 = vpop.eup %3815  ;;  %v2641_v56 = vmul.f32 %v3814_v29, %v2611_v26  ;;  %v3094_v61 = vunpack.c.l.bf16 %v3110_v43  ;;  %3825 = vrcp.f32 %v2509_v20  ;;  %v2511_v55 = vadd.f32 %v3810_v15, %v2510_v8 }
 0x283   : > { %v3818_v5 = vpop.eup %3817  ;;  %v2642_v57 = vmul.f32 %v3816_v41, %v2614_v49  ;;  %v2625_v27 = vadd.f32 %v2624_v31, %v2598_v3  ;;  %v2599_v11 = vmul.f32 %v3802_v60, %v3078_v36  ;;  %v3063_v45 = vunpack.c.h.bf16 %v3102_v59 }
 0x284   : > { %v3820_v13 = vpop.eup %3819  ;;  %2649 = vst [vmem:[%s4337_s3] sm:$0xff] %v2641_v56  ;;  %v2643_v2 = vmul.f32 %v3818_v5, %v2617_v16  ;;  %v2627_v35 = vadd.f32 %v2591_v28, %v2583_v6  ;;  %v2512_v4 = vadd.f32 %v3812_v48, %v2511_v55  ;;  %v3079_v53 = vunpack.c.h.bf16 %v3106_v62 }
 0x285   : > { %2650 = vst [vmem:[%s4337_s3 + $0x8] sm:$0xff] %v2642_v57  ;;  %v2644_v33 = vmul.f32 %v3820_v13, %v2620_v42  ;;  %v2584_v26 = vmul.f32 %v3806_v22, %v3047_v63  ;;  %v2592_v7 = vmul.f32 %v3808_v0, %v3063_v45  ;;  %v2623_v38 = vadd.f32 %v2622_v10, %v2605_v37 }
 0x286   : > { %2651 = vst [vmem:[%s4337_s3 + $0x10] sm:$0xff] %v2643_v2  ;;  %3827 = vrcp.f32 %v2512_v4  ;;  %v2626_v49 = vadd.f32 %v2625_v27, %v2606_v51  ;;  %v2607_v25 = vmul.f32 %v3804_v47, %v3094_v61  ;;  %v2628_v9 = vadd.f32 %v2627_v35, %v2599_v11 }
 0x287   : > { %2652 = vst [vmem:[%s4337_s3 + $0x18] sm:$0xff] %v2644_v33  ;;  %v3095_v50 = vunpack.c.h.bf16 %v3110_v43  ;;  %v2600_v12 = vmul.f32 %v3810_v15, %v3079_v53  ;;  %v2630_v16 = vadd.f32 %v2592_v7, %v2584_v26 }
 0x288   : > { %v2629_v54 = vadd.f32 %v2628_v9, %v2607_v25 }
 0x289   : > { %v3822_v44 = vpop.eup %3821  ;;  %v2608_v14 = vmul.f32 %v3812_v48, %v3095_v50  ;;  %v2631_v39 = vadd.f32 %v2630_v16, %v2600_v12 }
 0x28a   : > { %v2645_v18 = vmul.f32 %v3822_v44, %v2623_v38 }
 0x28b   : > { %v3824_v40 = vpop.eup %3823  ;;  %v2632_v59 = vadd.f32 %v2631_v39, %v2608_v14 }
 0x28c   : > { %2653 = vst [vmem:[%s4337_s3 + $0x20] sm:$0xff] %v2645_v18  ;;  %v2646_v60 = vmul.f32 %v3824_v40, %v2626_v49 }
 0x28e   : > { %2654 = vst [vmem:[%s4337_s3 + $0x28] sm:$0xff] %v2646_v60 }
 0x28f   : > { %v3826_v30 = vpop.eup %3825 }
 0x290   : > { %v2647_v32 = vmul.f32 %v3826_v30, %v2629_v54 }
 0x292   : > { %2655 = vst [vmem:[%s4337_s3 + $0x30] sm:$0xff] %v2647_v32 }
 0x293   : > { %v3828_v47 = vpop.eup %3827 }
 0x294   : > { %v2648_v46 = vmul.f32 %v3828_v47, %v2632_v59 }
 0x296   : > { %2656 = vst [vmem:[%s4337_s3 + $0x38] sm:$0xff] %v2648_v46 }
 0x297 PF: > { %s2658_s21 = scalar_lea.sflag [#allocation6], %s4318_s13  ;;  %s2663_s16 = scalar_lea.sflag [#allocation8], %s4318_s13 }
 0x298   : > { %s3030_s17 = sshll.u32 %s3913_s22, 10  ;;  %s2686_s26 = sshll.u32 %s4335_s0, 4  ;;  %s2687_s26 = int_to_ptr.vmem [resolvable:$true] %s2686_s26 }
 0x299   : > { %s2675_s9 = scalar_lea.hbm %s4942_s4, %s3030_s17  ;;  %s3927_s11 = smov 1024  }
 0x29a   : > { %3467 = sst [smem:[#allocation10]] (%p4022_p7), %s3927_s11  ;;  %s3928_s12 = smov 2048  }
 0x29b   : > { %3468 = sst [smem:[#allocation10 + $0x1]] (%p4022_p7), %s3928_s12  ;;  %s3929_s30 = smov 8  }
 0x29c   : > { %3469 = sst [smem:[#allocation10 + $0x2]] (%p4022_p7), %s3929_s30  ;;  %s3930_s28 = smov 128  }
 0x29d   : > { %3470 = sst [smem:[#allocation10 + $0x3]] (%p4022_p7), %s3930_s28  ;;  %s3931_s0 = smov 131072  }
 0x29e   : > { %3471 = sst [smem:[#allocation10 + $0x4]] (%p4022_p7), %s3930_s28  ;;  %s3932_s22 = smov 0  }
 0x29f   : > { %3472 = sst [smem:[#allocation10 + $0x5]] (%p4022_p7), %s3929_s30  ;;  %s4883_s15 = scalar_lea.hbm %s4943_s5, %s3030_s17 }
 0x2a0   : > { %3473 = dma.general (%p4022_p7), %s2687_s26, 4096, %s2675_s9, %s2658_s21, %s3931_s0, [#allocation10], %s3932_s22, 0  }
 0x2a1   : > { %s2715_s27 = sshll.u32 %s4337_s3, 4  ;;  %s3933_s11 = smov [#allocation7]   ;;  %s4886_s27 = int_to_ptr.vmem [resolvable:$true] %s2715_s27 }
 0x2a2   : > { %s3829_s8 = scalar_lea.vmem %s4886_s27, 1024  ;;  %s3833_s21 = sshll.u32 %s3933_s11, 4  ;;  %s3834_s21 = int_to_ptr.vmem [resolvable:$false] %s3833_s21 }
 0x2a3   : > { %p3830_p4 = scmp.ne.s32.totalorder %s4886_s27, %s3829_s8  ;;  %s3835_s26 = scalar_lea.vmem %s3834_s21, 2048 }
 0x2a4   : > { %p3836_p8 = scmp.lt.s32.totalorder %s4886_s27, %s3834_s21  ;;  %p3837_p10 = scmp.lt.s32.totalorder %s3835_s26, %s3829_s8 }
 0x2a5   : > { %p3831_p5 = pnand %p3830_p4, %p4022_p7 }
 0x2a6   : > { %p3838_p11 = por %p3837_p10, %p3836_p8 }
 0x2a7   : > { %p3832_p6 = pneg %p3831_p5 }
 0x2a9   : > { %p3839_p12 = pnand %p3838_p11, %p3832_p6 }
 0x2ab   : > { %3842 = shalt.err (!%p3839_p12)
}
 0x2ac   : > { %s3843_s3 = scalar_lea.hbm %s4883_s15, 1024  ;;  %s3847_s12 = scalar_lea.hbm %s4943_s5, 2048 }
 0x2ad   : > { %p3844_p13 = scmp.ne.s32.totalorder %s4883_s15, %s3843_s3  ;;  %p3848_p2 = scmp.lt.s32.totalorder %s4883_s15, %s4943_s5 }
 0x2ae   : > { %p3849_p3 = scmp.lt.s32.totalorder %s3847_s12, %s3843_s3 }
 0x2af   : > { %p3845_p0 = pnand %p3844_p13, %p4022_p7 }
 0x2b0   : > { %p3850_p4 = por %p3849_p3, %p3848_p2 }
 0x2b1   : > { %p3846_p1 = pneg %p3845_p0 }
 0x2b3   : > { %p3851_p5 = pnand %p3850_p4, %p3846_p1 }
 0x2b5   : > { %3854 = shalt.err (!%p3851_p5)
}
 0x2b6   : > { %s3934_s0 = smov 128   ;;  %s3935_s22 = smov 8  }
 0x2b7   : > { %3474 = dma.vmem_to_hbm [thread:$0]  (%p4022_p7), %s4886_s27, 1024, %s4883_s15, %s2663_s16, %s3934_s0, %s3934_s0, %s3935_s22  }
 0x2b8 PF: > { %p3484_p6 = scmp.ge.s32.totalorder %s3925_s25, 2  ;;  %s2730_s29 = sand.u32 1, %s3897_s18  }
 0x2b9   : > { %s2731_s14 = scalar_lea.sflag [#allocation6], %s2730_s29 }
 0x2ba   : > { %p3478_p8 = pnand %p3484_p6, %p4028_p9 }
 0x2bc   : > { %p3479_p10 = pneg %p3478_p8 }
 0x2be   : > { %3888 = dma.done.wait (%p3479_p10), %s2731_s14, 4096  }
 0x2bf   : > { %3890 = vsyncadd (%p3479_p10), %s2731_s14, 4294963200  ;;  %s2740_s8 = scalar_lea.sflag [#allocation8], %s2730_s29 }
 0x2c0   : > { %3892 = dma.done.wait (%p3479_p10), %s2740_s8, 1024  }
 0x2c1   : > { %3894 = vsyncadd (%p3479_p10), %s2740_s8, 4294966272  ;;  %s22_s25 = sadd.s32 1, %s3925_s25   ;;  %s4966_s6 = sld [smem:[#allocation13_spill]] }
 0x2c2   : > { %p19_p11 = scmp.ge.s32.totalorder %s22_s25, 8   ;;  %s4967_s13 = sld [smem:[#allocation14_spill]] }
 0x2c3   : > { %s4968_s18 = smov %s3901_s19  ;;  %s4969_s19 = smov %s3905_s20 }
 0x2c4   : > { %s4970_s20 = smov %s4036_s10  ;;  %s4971_s21 = smov %s3917_s23 }
 0x2c5   : > { %s4972_s22 = smov %s3921_s24  ;;  %21 = sbr.rel (!%p19_p11) target bundleno = 10 (0xa), region = 182 }
 0x2c7   : > { %s4973_s23 = smov %s4966_s6 }
 0x2c8   : > { %s4974_s24 = smov %s4967_s13 }
 0x2ca   :  { %2745 = vsyncpa [#allocation6], 1 }
 0x2cb   :  { %2747 = vsyncpa [#allocation6 + $0x1], 1 }
 0x2cc   :  { %2748 = vsyncpa [#allocation8], 1 }
 0x2cd   :  { %2750 = vsyncpa [#allocation8 + $0x1], 1 }

</bundles_post_ra>
